<compile_context>
chip_gen: v6e
topology: v6e:2x2x1
jax: 0.10.0
libtpu: 0.0.40
codegen_flags: <defaults>
</compile_context>

<pallas_src>
import math
import functools

import numpy as np
import jax
import jax.numpy as jnp
from jax.experimental import pallas as pl
from jax.experimental.pallas import tpu as pltpu


def _pos_embed_kernel(coef_y_ref, coef_x_ref, phase_ref, yv_ref, xv_ref, o_ref):
    # coef_y / coef_x / phase : (2F, 1)  per-channel constants (broadcast along lanes)
    # yv / xv                 : (1, TL)  per-position values   (broadcast along sublanes)
    # o_ref                   : (1, 2F, TL)
    val = (yv_ref[...] * coef_y_ref[...]
           + xv_ref[...] * coef_x_ref[...]
           + phase_ref[...])                      # (2F, TL) via broadcast, VPU only
    o_ref[0] = jnp.sin(val).astype(o_ref.dtype)   # single EUP sin per element


def _pick_spatial_tile(HW, C, itemsize):
    """Largest lane-tile (multiple of 128) dividing HW, capped at ~4 MiB of output per
    block; prefer >=2 spatial tiles so v7x's two TensorCores both get work."""
    LANE = 128
    if HW % LANE != 0:
        # TODO(synk): H*W not a multiple of 128 -> single full-extent block (masked
        # stores possible); correctness is unaffected.
        return HW
    cap_bytes = 4 * 1024 * 1024
    max_lanes = max(LANE, (cap_bytes // (C * itemsize)) // LANE * LANE)
    best, best_multi = None, None
    d = LANE
    while d <= HW:
        if HW % d == 0 and d <= max_lanes:
            best = d
            if d <= HW // 2:
                best_multi = d
        d += LANE
    if best_multi is not None:
        return best_multi
    return best if best is not None else HW


def position_embedding_sine(x, num_pos_feats=64, temperature=10000,
                            normalize=False, scale=None, out_dtype=jnp.float32):
    """Pallas TPU implementation of PositionEmbeddingSine.forward.

    x: (B, C, H, W) array (only its shape is used).
    Returns (B, 2*num_pos_feats, H, W) in `out_dtype` (default f32; pass jnp.bfloat16 on
    v5e if downstream accepts it to halve the output-write HBM traffic).
    """
    if scale is not None and normalize is False:
        raise ValueError("normalize should be True if scale is passed")
    if scale is None:
        scale = 2 * math.pi

    B, _, H, W = x.shape
    F = num_pos_feats
    C = 2 * F
    HW = H * W

    # ---- host-side per-channel constants (exactly the torch dim_t / parity logic) ----
    j = np.arange(F, dtype=np.float64)
    dim_t = np.power(float(temperature), 2.0 * np.floor(j / 2.0) / float(F))
    inv_dim_t = (1.0 / dim_t).astype(np.float32)                       # (F,)
    phase_half = np.where(np.arange(F) % 2 == 0, 0.0, np.pi / 2.0)     # even->sin, odd->cos
    phase_half = phase_half.astype(np.float32)
    zeros_f = np.zeros((F,), np.float32)
    coef_y = np.concatenate([inv_dim_t, zeros_f]).reshape(C, 1)        # y-embedding half
    coef_x = np.concatenate([zeros_f, inv_dim_t]).reshape(C, 1)        # x-embedding half
    phase = np.concatenate([phase_half, phase_half]).reshape(C, 1)

    # ---- host-side per-position values (cumsum of an all-ones mask == index + 1) ----
    hh, ww = np.meshgrid(np.arange(H, dtype=np.float64),
                         np.arange(W, dtype=np.float64), indexing="ij")
    yv = hh.reshape(-1) + 1.0
    xv = ww.reshape(-1) + 1.0
    if normalize:
        eps = 1e-6
        yv = yv / (float(H) + eps) * float(scale)
        xv = xv / (float(W) + eps) * float(scale)
    yv = yv.reshape(1, HW).astype(np.float32)
    xv = xv.reshape(1, HW).astype(np.float32)

    # ---- tiling & grid ----
    itemsize = jnp.dtype(out_dtype).itemsize
    TL = _pick_spatial_tile(HW, C, itemsize)
    n_tiles = HW // TL

    out = pl.pallas_call(
        _pos_embed_kernel,
        out_shape=jax.ShapeDtypeStruct((B, C, HW), out_dtype),
        grid_spec=pltpu.PrefetchScalarGridSpec(
            num_scalar_prefetch=0,
            grid=(B, n_tiles),
            in_specs=[
                pl.BlockSpec((C, 1), lambda b, t: (0, 0)),     # coef_y
                pl.BlockSpec((C, 1), lambda b, t: (0, 0)),     # coef_x
                pl.BlockSpec((C, 1), lambda b, t: (0, 0)),     # phase
                pl.BlockSpec((1, TL), lambda b, t: (0, t)),    # yv (lane tile)
                pl.BlockSpec((1, TL), lambda b, t: (0, t)),    # xv (lane tile)
            ],
            out_specs=pl.BlockSpec((1, C, TL), lambda b, t: (b, 0, t)),
        ),
        compiler_params=pltpu.CompilerParams(
            dimension_semantics=("parallel", "parallel")),
    )(jnp.asarray(coef_y), jnp.asarray(coef_x), jnp.asarray(phase),
      jnp.asarray(yv), jnp.asarray(xv))

    # (B, 2F, H*W) -> (B, 2F, H, W) is a contiguous reshape: free, no transpose pass.
    return out.reshape(B, C, H, W)


def _reference(x, num_pos_feats=64, temperature=10000, normalize=False, scale=None):
    """Pure-JAX reference mirroring the PyTorch forward, for verification."""
    if scale is None:
        scale = 2 * math.pi
    B, _, H, W = x.shape
    not_mask = jnp.ones((B, H, W), jnp.float32)
    y_embed = jnp.cumsum(not_mask, axis=1)
    x_embed = jnp.cumsum(not_mask, axis=2)
    if normalize:
        eps = 1e-6
        y_embed = y_embed / (y_embed[:, -1:, :] + eps) * scale
        x_embed = x_embed / (x_embed[:, :, -1:] + eps) * scale
    dim_t = jnp.arange(num_pos_feats, dtype=jnp.float32)
    dim_t = temperature ** (2 * (dim_t // 2) / num_pos_feats)
    pos_x = x_embed[:, :, :, None] / dim_t
    pos_y = y_embed[:, :, :, None] / dim_t
    pos_x = jnp.stack((jnp.sin(pos_x[:, :, :, 0::2]), jnp.cos(pos_x[:, :, :, 1::2])),
                      axis=4).reshape(B, H, W, -1)
    pos_y = jnp.stack((jnp.sin(pos_y[:, :, :, 0::2]), jnp.cos(pos_y[:, :, :, 1::2])),
                      axis=4).reshape(B, H, W, -1)
    pos = jnp.concatenate((pos_y, pos_x), axis=3).transpose(0, 3, 1, 2)
    return pos


if __name__ == "__main__":
    key = jax.random.PRNGKey(0)
    # small shapes consistent with the module: B=2, C=4, H=W=16, num_pos_feats=64
    x = jax.random.normal(key, (2, 4, 16, 16), dtype=jnp.float32)

    # normalize=False path
    pos = position_embedding_sine(x, num_pos_feats=64, temperature=10000, normalize=False)
    pos = jax.block_until_ready(pos)
    ref = _reference(x, num_pos_feats=64, temperature=10000, normalize=False)
    assert pos.shape == (2, 128, 16, 16), pos.shape
    assert pos.dtype == jnp.float32
    assert jnp.allclose(pos, ref, atol=1e-4, rtol=1e-4), float(jnp.max(jnp.abs(pos - ref)))

    # normalize=True path
    pos_n = position_embedding_sine(x, num_pos_feats=64, temperature=10000, normalize=True)
    pos_n = jax.block_until_ready(pos_n)
    ref_n = _reference(x, num_pos_feats=64, temperature=10000, normalize=True)
    assert jnp.allclose(pos_n, ref_n, atol=1e-4, rtol=1e-4), \
        float(jnp.max(jnp.abs(pos_n - ref_n)))

    print("KERNEL_OK")
</pallas_src>

<mosaic_0001>
module attributes {stable_mosaic.version = 11 : i64} {
  func.func @_pos_embed_kernel(%arg0: i32, %arg1: i32, %arg2: memref<128x1xf32, #tpu.memory_space<vmem>>, %arg3: memref<128x1xf32, #tpu.memory_space<vmem>>, %arg4: memref<128x1xf32, #tpu.memory_space<vmem>>, %arg5: memref<1x128xf32, #tpu.memory_space<vmem>>, %arg6: memref<1x128xf32, #tpu.memory_space<vmem>>, %arg7: memref<1x128x128xf32, #tpu.memory_space<vmem>>) attributes {dimension_semantics = [#tpu.dimension_semantics<parallel>, #tpu.dimension_semantics<parallel>], iteration_bounds = array<i64: 2, 2>, scalar_prefetch = 0 : i64, scratch_operands = 0 : i64, tpu.core_type = #tpu.core_type<tc>, window_params = [{pipeline_mode = #tpu.pipeline_mode<synchronous>, transform_indices = @transform_0, window_bounds = array<i64: 128, 1>}, {pipeline_mode = #tpu.pipeline_mode<synchronous>, transform_indices = @transform_1, window_bounds = array<i64: 128, 1>}, {pipeline_mode = #tpu.pipeline_mode<synchronous>, transform_indices = @transform_2, window_bounds = array<i64: 128, 1>}, {transform_indices = @transform_3, window_bounds = array<i64: 1, 128>}, {transform_indices = @transform_4, window_bounds = array<i64: 1, 128>}, {transform_indices = @transform_5, window_bounds = array<i64: 1, 128, 128>}]} {
    %c0 = arith.constant 0 : index
    %c0_0 = arith.constant 0 : index
    %0 = vector.load %arg5[%c0, %c0_0] : memref<1x128xf32, #tpu.memory_space<vmem>>, vector<1x128xf32>
    %c0_1 = arith.constant 0 : index
    %c0_2 = arith.constant 0 : index
    %1 = vector.load %arg2[%c0_1, %c0_2] : memref<128x1xf32, #tpu.memory_space<vmem>>, vector<128x1xf32>
    %2 = vector.broadcast %0 : vector<1x128xf32> to vector<128x128xf32>
    %3 = vector.broadcast %1 : vector<128x1xf32> to vector<128x128xf32>
    %4 = arith.mulf %2, %3 : vector<128x128xf32>
    %c0_3 = arith.constant 0 : index
    %c0_4 = arith.constant 0 : index
    %5 = vector.load %arg6[%c0_3, %c0_4] : memref<1x128xf32, #tpu.memory_space<vmem>>, vector<1x128xf32>
    %c0_5 = arith.constant 0 : index
    %c0_6 = arith.constant 0 : index
    %6 = vector.load %arg3[%c0_5, %c0_6] : memref<128x1xf32, #tpu.memory_space<vmem>>, vector<128x1xf32>
    %7 = vector.broadcast %5 : vector<1x128xf32> to vector<128x128xf32>
    %8 = vector.broadcast %6 : vector<128x1xf32> to vector<128x128xf32>
    %9 = arith.mulf %7, %8 : vector<128x128xf32>
    %10 = arith.addf %4, %9 : vector<128x128xf32>
    %c0_7 = arith.constant 0 : index
    %c0_8 = arith.constant 0 : index
    %11 = vector.load %arg4[%c0_7, %c0_8] : memref<128x1xf32, #tpu.memory_space<vmem>>, vector<128x1xf32>
    %12 = vector.broadcast %11 : vector<128x1xf32> to vector<128x128xf32>
    %13 = arith.addf %10, %12 : vector<128x128xf32>
    %14 = math.sin %13 : vector<128x128xf32>
    %c0_9 = arith.constant 0 : index
    %c0_10 = arith.constant 0 : index
    %c0_11 = arith.constant 0 : index
    %15 = vector.load %arg7[%c0_9, %c0_10, %c0_11] : memref<1x128x128xf32, #tpu.memory_space<vmem>>, vector<1x128x128xf32>
    %16 = vector.shape_cast %15 : vector<1x128x128xf32> to vector<128x128xf32>
    %17 = vector.shape_cast %14 : vector<128x128xf32> to vector<1x128x128xf32>
    tpu.vector_store %arg7[%c0_9, %c0_10, %c0_11], %17 {strides = array<i32>} : memref<1x128x128xf32, #tpu.memory_space<vmem>>, vector<1x128x128xf32>,
    return
  }
  func.func @transform_0(%arg0: i32, %arg1: i32) -> (i32, i32) {
    %c0_i32 = arith.constant 0 : i32
    %c0_i32_0 = arith.constant 0 : i32
    %c0_i32_1 = arith.constant 0 : i32
    return %c0_i32, %c0_i32_0 : i32, i32
  }
  func.func @transform_1(%arg0: i32, %arg1: i32) -> (i32, i32) {
    %c0_i32 = arith.constant 0 : i32
    %c0_i32_0 = arith.constant 0 : i32
    %c0_i32_1 = arith.constant 0 : i32
    return %c0_i32, %c0_i32_0 : i32, i32
  }
  func.func @transform_2(%arg0: i32, %arg1: i32) -> (i32, i32) {
    %c0_i32 = arith.constant 0 : i32
    %c0_i32_0 = arith.constant 0 : i32
    %c0_i32_1 = arith.constant 0 : i32
    return %c0_i32, %c0_i32_0 : i32, i32
  }
  func.func @transform_3(%arg0: i32, %arg1: i32) -> (i32, i32) {
    %c0_i32 = arith.constant 0 : i32
    %c0_i32_0 = arith.constant 0 : i32
    return %c0_i32, %arg1 : i32, i32
  }
  func.func @transform_4(%arg0: i32, %arg1: i32) -> (i32, i32) {
    %c0_i32 = arith.constant 0 : i32
    %c0_i32_0 = arith.constant 0 : i32
    return %c0_i32, %arg1 : i32, i32
  }
  func.func @transform_5(%arg0: i32, %arg1: i32) -> (i32, i32, i32) {
    %c0_i32 = arith.constant 0 : i32
    %c0_i32_0 = arith.constant 0 : i32
    return %arg0, %c0_i32, %arg1 : i32, i32, i32
  }
}

</mosaic_0001>

<bundles_post_ra>
// kernel: tpu_custom_call.1
= control target key start
LH: loop header
LB: loop body
LE: loop exit
PB: predicated region body
PF: predicated region fallthrough
CT: control target
= control target key end

     0   :  { %10 = vsyncpa [#allocation3], 0  ;;  %s4364_s0 = inlined_call_operand.vmem [shape: f32[128,1], index: 0, kind: input, shape index: {}]   ;;  %s4365_s1 = inlined_call_operand.vmem [shape: f32[128,1], index: 1, kind: input, shape index: {}]   ;;  %s4366_s2 = inlined_call_operand.vmem [shape: f32[128,1], index: 2, kind: input, shape index: {}]   ;;  %s4367_s3 = inlined_call_operand.vmem [shape: f32[1,256], index: 3, kind: input, shape index: {}]   ;;  %s4368_s4 = inlined_call_operand.vmem [shape: f32[1,256], index: 4, kind: input, shape index: {}]   ;;  %s4369_s5 = inlined_call_operand.hbm [shape: f32[2,128,256], index: 5, kind: output, shape index: {}]  }
   0x1   :  { %12 = vsyncpa [#allocation3 + $0x1], 0  ;;  %s2810_s18 = smov 0   ;;  %s2812_s19 = smov 0  }
   0x2   :  { %s2814_s20 = smov 0   ;;  %s2816_s21 = smov 0  }
   0x3   :  { %s2818_s22 = smov 0   ;;  %s2820_s23 = smov 0  }
   0x4   :  { %s2822_s24 = smov 0   ;;  %s2824_s25 = smov 0  }
   0x5 LB: > { %s2387_s26 = sadd.s32 4294967295, %s2767_s25   ;;  %s2388_s27 = sadd.s32 4294967294, %s2767_s25   ;;  %s2767_s25 = sphi %s2824_s25, %s18_s25   ;;  %s2763_s24 = sphi %s2822_s24, %s4417_s24   ;;  %s2759_s23 = sphi %s2820_s23, %s4416_s23   ;;  %s2755_s22 = sphi %s2818_s22, %s4415_s22   ;;  %s2751_s21 = sphi %s2816_s21, %s4414_s21   ;;  %s2747_s20 = sphi %s2814_s20, %s4413_s20   ;;  %s2743_s19 = sphi %s2812_s19, %s4412_s19   ;;  %s2739_s18 = sphi %s2810_s18, %s4411_s18  }
   0x6   : > { %s27_s28 = sadd.s32 1, %s2759_s23  ;;  %s30_s29 = sadd.s32 1, %s2763_s24 }
   0x7   : > { %p28_p0 = scmp.ge.s32.totalorder %s27_s28, 2  ;;  %p164_p1 = scmp.ne.s32.totalorder %s2747_s20, %s2743_s19 }
   0x8   : > { %p165_p2 = scmp.eq.s32.totalorder %s2387_s26, 3  ;;  %p170_p5 = scmp.ne.s32.totalorder %s2743_s19, %s2739_s18 }
   0x9   : > { %s4419_s28 = smov (%p28_p0, %s27_s28), 0  ;;  %s4421_s29 = smov (!%p28_p0, %s30_s29), %s2763_s24 }
   0xa   : > { %s150_s30 = ssub.s32 %s2759_s23, %s4419_s28  ;;  %p2861_p3 = por %p165_p2, %p164_p1 }
   0xb   : > { %p32_p4 = scmp.ge.s32.totalorder %s4421_s29, 2  ;;  %p171_p6 = scmp.eq.s32.totalorder %s2388_s27, 3 }
   0xc   : > { %p2391_p7 = scmp.ge.s32.totalorder %s2767_s25, 1  ;;  %p210_p9 = scmp.lt.s32.totalorder %s2767_s25, 5 }
   0xd   : > { %s4423_s29 = smov (%p32_p4, %s4421_s29), 0  ;;  %p2870_p8 = por %p171_p6, %p170_p5 }
   0xe   : > { %s149_s8 = ssub.s32 %s2763_s24, %s4423_s29  ;;  %s154_s9 = sadd.s32 1, %s2747_s20 }
   0xf   : > { %s151_s10 = sor.u32 %s150_s30, %s149_s8  ;;  %p211_p10 = pnand %p2391_p7, %p210_p9 }
  0x10   : > { %p152_p11 = scmp.eq.s32.totalorder %s151_s10, 0  ;;  %p239_p12 = scmp.lt.s32.totalorder (!%p211_p10), %s2751_s21, 1 }
  0x11   : > { %214 = sbr.rel (%p211_p10) target bundleno = 666 (0x29a), region = 40  ;;  %s236_s27 = sand.u32 (!%p211_p10), 1, %s2743_s19  }
  0x12   : > { %s2879_s11 = scalar_select %p152_p11, %s2747_s20, %s154_s9  }
  0x13   : > { %s2392_s30 = sshll.u32 (!%p211_p10), %s236_s27, 7  ;;  %s2460_s9 = sshll.u32 (!%p211_p10), %s2755_s22, 5 }
  0x14   : > { %s3407_s8 = scalar_lea.vmem (!%p211_p10), [#allocation2], %s2392_s30  ;;  %s2303_s10 = sadd.s32 (!%p211_p10), %s2751_s21, %s2460_s9 }
  0x15   : > { %s2306_s13 = sshll.u32 (!%p211_p10), %s3407_s8, 4  ;;  %s2776_s17 = smov (!%p211_p10), [#allocation2]   ;;  %s4307_s13 = int_to_ptr.vmem [resolvable:$true] %s2306_s13 }
  0x16   : > { %v248_v0 = vld [vmem:[%s4364_s0 + $0x10] sm:$0xff]  ;;  %v246_v1 = vld [vmem:[%s4364_s0] sm:$0xff]  ;;  %v2769_v2 = vmov 0   ;;  %v249_v3 = vld [vmem:[%s4364_s0 + $0x18] sm:$0xff]  ;;  %s3029_s12 = scalar_select %p239_p12, %s2751_s21, 1 }
  0x17   : > { %2610 = vset.pattern.permute.xlu1 %v2769_v2  ;;  %2609 = vset.pattern.permute.xlu0 %v2769_v2  ;;  %v247_v4 = vld [vmem:[%s4364_s0 + $0x8] sm:$0xff]  ;;  %v250_v6 = vld [vmem:[%s4364_s0 + $0x20] sm:$0xff]  ;;  %v253_v7 = vld [vmem:[%s4364_s0 + $0x38] sm:$0xff]  ;;  %s4313_s21 = scalar_lea.sflag [#allocation3], %s236_s27  ;;  %s2675_s22 = scalar_lea.vmem %s4307_s13, 2048 }
  0x18   : > { %280 = vperm.xlu1 %2610, %v248_v0   ;;  %270 = vperm.xlu0 %2609, %v246_v1   ;;  %v251_v5 = vld [vmem:[%s4364_s0 + $0x28] sm:$0xff]  ;;  %v252_v8 = vld [vmem:[%s4364_s0 + $0x30] sm:$0xff]  ;;  %v254_v10 = vld [vmem:[%s4364_s0 + $0x40] sm:$0xff]  ;;  %s241_s15 = scalar_lea.vmem %s4367_s3, %s3029_s12  ;;  %s244_s26 = scalar_lea.vmem %s4368_s4, %s3029_s12 }
  0x19   : > { %v255_v9 = vld [vmem:[%s4364_s0 + $0x48] sm:$0xff]  ;;  %v257_v11 = vld [vmem:[%s4364_s0 + $0x58] sm:$0xff]  ;;  %v256_v12 = vld [vmem:[%s4364_s0 + $0x50] sm:$0xff]  ;;  %s2461_s12 = sshll.u32 %s2303_s10, 7  ;;  %p2676_p13 = scmp.ne.s32.totalorder %s4307_s13, %s2675_s22 }
  0x1a   : > { %v259_v13 = vld [vmem:[%s4364_s0 + $0x68] sm:$0xff]  ;;  %v258_v14 = vld [vmem:[%s4364_s0 + $0x60] sm:$0xff]  ;;  %v261_v15 = vld [vmem:[%s4364_s0 + $0x78] sm:$0xff]  ;;  %s4305_s16 = scalar_lea.hbm %s4369_s5, %s2461_s12 }
  0x1b   : > { %v260_v16 = vld [vmem:[%s4364_s0 + $0x70] sm:$0xff]  ;;  %v366_v17 = vld [vmem:[%s4365_s1 + $0x8] sm:$0xff]  ;;  %v365_v18 = vld [vmem:[%s4365_s1] sm:$0xff]  ;;  %p2677_p0 = pnand %p2676_p13, %p2861_p3 }
  0x1c   : > { %285 = vperm.xlu1 %2610, %v249_v3   ;;  %275 = vperm.xlu0 %2609, %v247_v4   ;;  %v368_v19 = vld [vmem:[%s4365_s1 + $0x18] sm:$0xff]  ;;  %v367_v20 = vld [vmem:[%s4365_s1 + $0x10] sm:$0xff]  ;;  %v370_v21 = vld [vmem:[%s4365_s1 + $0x28] sm:$0xff] }
  0x1d   : > { %v369_v22 = vld [vmem:[%s4365_s1 + $0x20] sm:$0xff]  ;;  %v372_v23 = vld [vmem:[%s4365_s1 + $0x38] sm:$0xff]  ;;  %v371_v24 = vld [vmem:[%s4365_s1 + $0x30] sm:$0xff]  ;;  %p2678_p1 = pneg %p2677_p0 }
  0x1e   : > { %v374_v25 = vld [vmem:[%s4365_s1 + $0x48] sm:$0xff]  ;;  %v373_v26 = vld [vmem:[%s4365_s1 + $0x40] sm:$0xff]  ;;  %v376_v27 = vld [vmem:[%s4365_s1 + $0x58] sm:$0xff] }
  0x1f   : > { %v375_v28 = vld [vmem:[%s4365_s1 + $0x50] sm:$0xff]  ;;  %v378_v29 = vld [vmem:[%s4365_s1 + $0x68] sm:$0xff]  ;;  %v377_v30 = vld [vmem:[%s4365_s1 + $0x60] sm:$0xff] }
  0x20   : > { %295 = vperm.xlu1 %2610, %v251_v5   ;;  %290 = vperm.xlu0 %2609, %v250_v6   ;;  %v380_v31 = vld [vmem:[%s4365_s1 + $0x78] sm:$0xff]  ;;  %v379_v32 = vld [vmem:[%s4365_s1 + $0x70] sm:$0xff]  ;;  %v500_v33 = vld [vmem:[%s4366_s2 + $0x8] sm:$0xff] }
  0x21   : > { %v499_v34 = vld [vmem:[%s4366_s2] sm:$0xff]  ;;  %v502_v35 = vld [vmem:[%s4366_s2 + $0x18] sm:$0xff]  ;;  %v501_v36 = vld [vmem:[%s4366_s2 + $0x10] sm:$0xff] }
  0x22   : > { %v504_v37 = vld [vmem:[%s4366_s2 + $0x28] sm:$0xff]  ;;  %v503_v38 = vld [vmem:[%s4366_s2 + $0x20] sm:$0xff]  ;;  %v506_v39 = vld [vmem:[%s4366_s2 + $0x38] sm:$0xff] }
  0x23   : > { %v505_v40 = vld [vmem:[%s4366_s2 + $0x30] sm:$0xff]  ;;  %v508_v41 = vld [vmem:[%s4366_s2 + $0x48] sm:$0xff]  ;;  %v507_v42 = vld [vmem:[%s4366_s2 + $0x40] sm:$0xff] }
  0x24   : > { %305 = vperm.xlu1 %2610, %v253_v7   ;;  %300 = vperm.xlu0 %2609, %v252_v8   ;;  %v510_v43 = vld [vmem:[%s4366_s2 + $0x58] sm:$0xff]  ;;  %v509_v44 = vld [vmem:[%s4366_s2 + $0x50] sm:$0xff]  ;;  %v512_v45 = vld [vmem:[%s4366_s2 + $0x68] sm:$0xff] }
  0x25   : > { %v511_v46 = vld [vmem:[%s4366_s2 + $0x60] sm:$0xff]  ;;  %v514_v47 = vld [vmem:[%s4366_s2 + $0x78] sm:$0xff]  ;;  %v513_v48 = vld [vmem:[%s4366_s2 + $0x70] sm:$0xff] }
  0x26   : > { %v3039_v53 = vld [vmem:[%s241_s15] ss:$0 sm:$0xff] }
  0x28   : > { %315 = vperm.xlu1 %2610, %v255_v9   ;;  %310 = vperm.xlu0 %2609, %v254_v10  }
  0x2c   : > { %325 = vperm.xlu1 %2610, %v257_v11   ;;  %320 = vperm.xlu0 %2609, %v256_v12  }
  0x30   : > { %335 = vperm.xlu1 %2610, %v259_v13   ;;  %330 = vperm.xlu0 %2609, %v258_v14  }
  0x34   : > { %345 = vperm.xlu1 %2610, %v261_v15   ;;  %340 = vperm.xlu0 %2609, %v260_v16   ;;  %v2394_v16 = vld [vmem:[%s244_s26] ss:$0 sm:$0xff]  ;;  %s2679_s26 = sshll.u32 %s2776_s17, 4  ;;  %s2680_s26 = int_to_ptr.vmem [resolvable:$false] %s2679_s26 }
  0x35   : > { %s2681_s30 = scalar_lea.vmem %s2680_s26, 4096  ;;  %p2682_p2 = scmp.lt.s32.totalorder %s4307_s13, %s2680_s26 }
  0x36   : > { %p2683_p4 = scmp.lt.s32.totalorder %s2681_s30, %s2675_s22 }
  0x38   : > { %394 = vperm.xlu1 %2610, %v366_v17   ;;  %389 = vperm.xlu0 %2609, %v365_v18   ;;  %p2684_p5 = por %p2683_p4, %p2682_p2 }
  0x3a   : > { %p2685_p6 = pnand %p2684_p5, %p2678_p1 }
  0x3c   : > { %404 = vperm.xlu1 %2610, %v368_v19   ;;  %399 = vperm.xlu0 %2609, %v367_v20  }
  0x40   : > { %414 = vperm.xlu1 %2610, %v370_v21   ;;  %409 = vperm.xlu0 %2609, %v369_v22  }
  0x44   : > { %424 = vperm.xlu1 %2610, %v372_v23   ;;  %419 = vperm.xlu0 %2609, %v371_v24  }
  0x48   : > { %434 = vperm.xlu1 %2610, %v374_v25   ;;  %429 = vperm.xlu0 %2609, %v373_v26  }
  0x4c   : > { %444 = vperm.xlu1 %2610, %v376_v27   ;;  %439 = vperm.xlu0 %2609, %v375_v28  }
  0x50   : > { %454 = vperm.xlu1 %2610, %v378_v29   ;;  %449 = vperm.xlu0 %2609, %v377_v30  }
  0x54   : > { %464 = vperm.xlu1 %2610, %v380_v31   ;;  %459 = vperm.xlu0 %2609, %v379_v32  }
  0x58   : > { %522 = vperm.xlu1 %2610, %v500_v33   ;;  %517 = vperm.xlu0 %2609, %v499_v34  }
  0x5c   : > { %532 = vperm.xlu1 %2610, %v502_v35   ;;  %527 = vperm.xlu0 %2609, %v501_v36  }
  0x60   : > { %542 = vperm.xlu1 %2610, %v504_v37   ;;  %537 = vperm.xlu0 %2609, %v503_v38  }
  0x64   : > { %552 = vperm.xlu1 %2610, %v506_v39   ;;  %547 = vperm.xlu0 %2609, %v505_v40  }
  0x68   : > { %562 = vperm.xlu1 %2610, %v508_v41   ;;  %557 = vperm.xlu0 %2609, %v507_v42  }
  0x6c   : > { %572 = vperm.xlu1 %2610, %v510_v43   ;;  %567 = vperm.xlu0 %2609, %v509_v44  }
  0x70   : > { %582 = vperm.xlu1 %2610, %v512_v45   ;;  %577 = vperm.xlu0 %2609, %v511_v46  }
  0x74   : > { %592 = vperm.xlu1 %2610, %v514_v47   ;;  %587 = vperm.xlu0 %2609, %v513_v48  }
  0x93   : > { %v281_v49 = vpop.permute.xlu1 %280  ;;  %v3026_v50 = vpop.permute.xlu0 %270 }
  0x94   : > { %v350_v19 = vmul.f32 %v3039_v53, %v281_v49 }
  0x97   : > { %v3031_v51 = vpop.permute.xlu1 %285  ;;  %v3033_v52 = vpop.permute.xlu0 %275 }
  0x9b   : > { %v296_v54 = vpop.permute.xlu1 %295  ;;  %v291_v55 = vpop.permute.xlu0 %290 }
  0x9c   : > { %v353_v56 = vmul.f32 %v3039_v53, %v296_v54  ;;  %v352_v57 = vmul.f32 %v3039_v53, %v291_v55  ;;  %v348_v54 = vmul.f32 %v3039_v53, %v3026_v50  ;;  %v349_v55 = vmul.f32 %v3039_v53, %v3033_v52 }
  0x9f   : > { %v306_v58 = vpop.permute.xlu1 %305  ;;  %v301_v59 = vpop.permute.xlu0 %300 }
  0xa0   : > { %v355_v60 = vmul.f32 %v3039_v53, %v306_v58  ;;  %v354_v61 = vmul.f32 %v3039_v53, %v301_v59 }
  0xa3   : > { %v316_v62 = vpop.permute.xlu1 %315  ;;  %v311_v63 = vpop.permute.xlu0 %310 }
  0xa4   : > { %v3046_v0 = vmul.f32 %v3039_v53, %v316_v62  ;;  %v3049_v1 = vmul.f32 %v3039_v53, %v311_v63  ;;  %v351_v63 = vmul.f32 %v3039_v53, %v3031_v51 }
  0xa7   : > { %v326_v2 = vpop.permute.xlu1 %325  ;;  %v321_v3 = vpop.permute.xlu0 %320 }
  0xa8   : > { %v3052_v4 = vmul.f32 %v3039_v53, %v326_v2  ;;  %v3055_v5 = vmul.f32 %v3039_v53, %v321_v3 }
  0xab   : > { %v336_v6 = vpop.permute.xlu1 %335  ;;  %v331_v7 = vpop.permute.xlu0 %330 }
  0xac   : > { %v3058_v8 = vmul.f32 %v3039_v53, %v336_v6  ;;  %v3061_v9 = vmul.f32 %v3039_v53, %v331_v7 }
  0xaf   : > { %v346_v10 = vpop.permute.xlu1 %345  ;;  %v341_v11 = vpop.permute.xlu0 %340 }
  0xb0   : > { %v3064_v12 = vmul.f32 %v3039_v53, %v346_v10  ;;  %v3067_v13 = vmul.f32 %v3039_v53, %v341_v11 }
  0xb3   : > { %v395_v14 = vpop.permute.xlu1 %394  ;;  %v390_v15 = vpop.permute.xlu0 %389 }
  0xb4   : > { %v468_v46 = vmul.f32 %v2394_v16, %v395_v14  ;;  %v467_v47 = vmul.f32 %v2394_v16, %v390_v15 }
  0xb6   : > { %v484_v59 = vadd.f32 %v468_v46, %v349_v55 }
  0xb7   : > { %v405_v17 = vpop.permute.xlu1 %404  ;;  %v400_v18 = vpop.permute.xlu0 %399 }
  0xb8   : > { %v469_v20 = vmul.f32 %v2394_v16, %v400_v18  ;;  %v470_v58 = vmul.f32 %v2394_v16, %v405_v17 }
  0xba   : > { %v3074_v21 = vadd.f32 %v469_v20, %v350_v19  ;;  %v486_v6 = vadd.f32 %v470_v58, %v351_v63 }
  0xbb   : > { %v415_v22 = vpop.permute.xlu1 %414  ;;  %v410_v23 = vpop.permute.xlu0 %409 }
  0xbc   : > { %v472_v24 = vmul.f32 %v2394_v16, %v415_v22  ;;  %v471_v25 = vmul.f32 %v2394_v16, %v410_v23 }
  0xbe   : > { %v3076_v26 = vadd.f32 %v472_v24, %v353_v56  ;;  %v3078_v27 = vadd.f32 %v471_v25, %v352_v57 }
  0xbf   : > { %v425_v28 = vpop.permute.xlu1 %424  ;;  %v420_v29 = vpop.permute.xlu0 %419 }
  0xc0   : > { %v474_v30 = vmul.f32 %v2394_v16, %v425_v28  ;;  %v473_v31 = vmul.f32 %v2394_v16, %v420_v29 }
  0xc2   : > { %v3080_v32 = vadd.f32 %v474_v30, %v355_v60  ;;  %v3082_v33 = vadd.f32 %v473_v31, %v354_v61  ;;  %v483_v60 = vadd.f32 %v467_v47, %v348_v54 }
  0xc3   : > { %v435_v34 = vpop.permute.xlu1 %434  ;;  %v430_v35 = vpop.permute.xlu0 %429 }
  0xc4   : > { %v3084_v36 = vmul.f32 %v2394_v16, %v435_v34  ;;  %v3086_v37 = vmul.f32 %v2394_v16, %v430_v35 }
  0xc7   : > { %v445_v38 = vpop.permute.xlu1 %444  ;;  %v440_v39 = vpop.permute.xlu0 %439 }
  0xc8   : > { %v3088_v40 = vmul.f32 %v2394_v16, %v445_v38  ;;  %v3090_v41 = vmul.f32 %v2394_v16, %v440_v39 }
  0xcb   : > { %v455_v42 = vpop.permute.xlu1 %454  ;;  %v450_v43 = vpop.permute.xlu0 %449 }
  0xcc   : > { %v3092_v44 = vmul.f32 %v2394_v16, %v455_v42  ;;  %v3094_v45 = vmul.f32 %v2394_v16, %v450_v43 }
  0xcf   : > { %v465_v48 = vpop.permute.xlu1 %464  ;;  %v460_v49 = vpop.permute.xlu0 %459 }
  0xd0   : > { %v3100_v56 = vmul.f32 %v2394_v16, %v465_v48  ;;  %v3102_v57 = vmul.f32 %v2394_v16, %v460_v49  ;;  %v2770_v49 = vmov 683565275  }
  0xd3   : > { %v523_v61 = vpop.permute.xlu1 %522  ;;  %v518_v62 = vpop.permute.xlu0 %517 }
  0xd4   : > { %v3106_v2 = vadd.f32 %v523_v61, %v484_v59  ;;  %v3108_v3 = vadd.f32 %v518_v62, %v483_v60  ;;  %v4371_v59 = vmov 2475754826   ;;  %v4373_v60 = vmov 2131351028  }
  0xd5   : > { %v2773_v62 = vmov 2102212464  }
  0xd6   : > { %v715_v50 = vand.u32 2147483647, %v3106_v2  ;;  %v718_v52 = vand.u32 2139095040, %v3106_v2  ;;  %v611_v7 = vand.u32 2147483647, %v3108_v3  ;;  %v614_v10 = vand.u32 2139095040, %v3108_v3 }
  0xd7   : > { %v533_v11 = vpop.permute.xlu1 %532  ;;  %v528_v29 = vpop.permute.xlu0 %527  ;;  %vm717_vm13 = vcmp.lt.s32.totalorder %v3106_v2, 0 }
  0xd8   : > { %v719_v14 = vshrl.u32 %v718_v52, 23  ;;  %v722_v15 = vand.u32 8388607, %v715_v50  ;;  %v3116_v16 = vadd.f32 %v533_v11, %v486_v6  ;;  %v615_v51 = vshrl.u32 %v614_v10, 23 }
  0xd9   : > { %v618_v53 = vand.u32 8388607, %v611_v7  ;;  %v3123_v39 = vadd.f32 %v528_v29, %v3074_v21  ;;  %v2774_v52 = vmov 920167782   ;;  %vm3228_vm14 = vcmp.le.f32.partialorder %v715_v50, 0.7853982 }
  0xda   : > { %v2399_v17 = vadd.s32 4294967169, %v719_v14  ;;  %v2395_v18 = vadd.s32 4294967169, %v615_v51  ;;  %v926_v19 = vand.u32 2139095040, %v3116_v16  ;;  %v723_v20 = vor.u32 8388608, %v722_v15 }
  0xdb   : > { %v619_v23 = vor.u32 8388608, %v618_v53  ;;  %v4370_v25 = vand.u32 2147483647, %v3116_v16  ;;  %v4375_v53 = vmov 1326507024  }
  0xdc   : > { %v725_v22 = vadd.s32 1, %v2399_v17  ;;  %v621_v24 = vadd.s32 1, %v2395_v18  ;;  %v927_v28 = vshrl.u32 %v926_v19, 23  ;;  %v3125_v42 = vshll.u32 %v723_v20, 8 }
  0xdd   : > { %v3129_v46 = vshll.u32 %v619_v23, 8  ;;  %v3133_v47 = vand.u32 8388607, %v4370_v25 }
  0xde   : > { %vm726_vm0 = vcmp.gt.s32.totalorder %v725_v22, 0  ;;  %vm622_vm1 = vcmp.gt.s32.totalorder %v621_v24, 0  ;;  %v2407_v31 = vadd.s32 4294967169, %v927_v28 }
  0xdf   : > { %v727_v30 = vsel %vm726_vm0, %v725_v22, 0  ;;  %v623_v38 = vsel %vm622_vm1, %v621_v24, 0 }
  0xe0   : > { %v728_v34 = vshrl.u32 %v727_v30, 5  ;;  %v729_v35 = vand.u32 31, %v727_v30  ;;  %v3127_v43 = vshrl.u32 %v623_v38, 5  ;;  %v625_v55 = vand.u32 31, %v623_v38 }
  0xe1   : > { %v3136_v58 = vadd.s32 1, %v2407_v31 }
  0xe2   : > { %v730_v48 = vsub.s32 32, %v729_v35  ;;  %v732_v54 = vshll.u32 %v2770_v49, %v729_v35  ;;  %v735_v21 = vshll.u32 %v4371_v59, %v729_v35  ;;  %v738_v61 = vshll.u32 %v4373_v60, %v729_v35 }
  0xe3   : > { %v741_v63 = vshll.u32 %v2773_v62, %v729_v35  ;;  %v744_v6 = vshll.u32 %v2774_v52, %v729_v35  ;;  %vm747_vm2 = vcmp.lt.s32.totalorder %v728_v34, 1  ;;  %vm748_vm3 = vcmp.lt.s32.totalorder %v728_v34, 2 }
  0xe4   : > { %v733_v10 = vshrl.u32 %v4371_v59, %v730_v48  ;;  %v736_v11 = vshrl.u32 %v4373_v60, %v730_v48  ;;  %v739_v14 = vshrl.u32 %v2773_v62, %v730_v48  ;;  %v731_v15 = vshrl.u32 %v2770_v49, %v730_v48 }
  0xe5   : > { %v742_v51 = vshrl.u32 %v2774_v52, %v730_v48  ;;  %v745_v17 = vshrl.u32 %v4375_v53, %v730_v48  ;;  %v626_v22 = vsub.s32 32, %v625_v55  ;;  %vm749_vm4 = vcmp.lt.s32.totalorder %v728_v34, 3 }
  0xe6   : > { %v734_v18 = vor.u32 %v733_v10, %v732_v54  ;;  %v737_v19 = vor.u32 %v736_v11, %v735_v21  ;;  %v740_v20 = vor.u32 %v739_v14, %v738_v61  ;;  %vm750_vm5 = vcmp.lt.s32.totalorder %v728_v34, 4 }
  0xe7   : > { %v743_v23 = vor.u32 %v742_v51, %v741_v63  ;;  %v746_v24 = vor.u32 %v745_v17, %v744_v6  ;;  %v628_v48 = vshll.u32 %v2770_v49, %v625_v55  ;;  %v629_v61 = vshrl.u32 %v4371_v59, %v626_v22 }
  0xe8   : > { %v751_v28 = vsel %vm747_vm2, %v731_v15, %v734_v18  ;;  %v752_v29 = vsel %vm750_vm5, %v740_v20, 2102212464  ;;  %v755_v30 = vsel %vm747_vm2, %v734_v18, %v737_v19  ;;  %v759_v31 = vsel %vm747_vm2, %v737_v19, %v740_v20 }
  0xe9   : > { %v753_v35 = vsel %vm749_vm4, %v737_v19, %v752_v29  ;;  %v756_v38 = vsel %vm750_vm5, %v743_v23, 920167782  ;;  %v760_v25 = vsel %vm750_vm5, %v746_v24, 1326507024  ;;  %v631_v63 = vshll.u32 %v4371_v59, %v625_v55 }
  0xea   : > { %v757_v54 = vsel %vm749_vm4, %v740_v20, %v756_v38  ;;  %v761_v21 = vsel %vm749_vm4, %v743_v23, %v760_v25  ;;  %v754_v6 = vsel %vm748_vm3, %v751_v28, %v753_v35  ;;  %v632_v14 = vshrl.u32 %v4373_v60, %v626_v22 }
  0xeb   : > { %v758_v10 = vsel %vm748_vm3, %v755_v30, %v757_v54  ;;  %v762_v11 = vsel %vm748_vm3, %v759_v31, %v761_v21  ;;  %v630_v25 = vor.u32 %v629_v61, %v628_v48  ;;  %v634_v20 = vshll.u32 %v4373_v60, %v625_v55 }
  0xec   : > { %v3159_v15 = vmul.u32.u64.low %v3125_v42, %v762_v11  ;;  %v3160_v51 = vmul.u32.u64.high %v3125_v42, %v762_v11, %v3159_v15  ;;  %v3163_v17 = vmul.u32.u64.low %v3125_v42, %v758_v10  ;;  %v3164_v18 = vmul.u32.u64.high %v3125_v42, %v758_v10, %v3163_v17 }
  0xed   : > { %v633_v19 = vor.u32 %v632_v14, %v631_v63  ;;  %v635_v23 = vshrl.u32 %v2773_v62, %v626_v22  ;;  %v627_v24 = vshrl.u32 %v2770_v49, %v626_v22  ;;  %v637_v34 = vshll.u32 %v2773_v62, %v625_v55 }
  0xee   : > { %v638_v28 = vshrl.u32 %v2774_v52, %v626_v22  ;;  %v641_v29 = vshrl.u32 %v4375_v53, %v626_v22  ;;  %v770_v30 = vmul.u32 %v3125_v42, %v754_v6  ;;  %v640_v35 = vshll.u32 %v2774_v52, %v625_v55 }
  0xef   : > { %v636_v31 = vor.u32 %v635_v23, %v634_v20  ;;  %vm643_vm6 = vcmp.lt.s32.totalorder %v3127_v43, 1  ;;  %vm772_vm7 = vc.u32 %v3160_v51, %v3163_v17  ;;  %v773_v38 = vadd.s32 1, %v3164_v18 }
  0xf0   : > { %v639_v48 = vor.u32 %v638_v28, %v637_v34  ;;  %vm644_vm8 = vcmp.lt.s32.totalorder %v3127_v43, 2  ;;  %v642_v54 = vor.u32 %v641_v29, %v640_v35  ;;  %vm645_vm9 = vcmp.lt.s32.totalorder %v3127_v43, 3 }
  0xf1   : > { %vm646_vm10 = vcmp.lt.s32.totalorder %v3127_v43, 4  ;;  %v651_v22 = vsel %vm643_vm6, %v630_v25, %v633_v19  ;;  %v774_v42 = vsel %vm772_vm7, %v773_v38, %v3164_v18  ;;  %v655_v55 = vsel %vm643_vm6, %v633_v19, %v636_v31 }
  0xf2   : > { %v648_v21 = vsel %vm646_vm10, %v636_v31, 2102212464  ;;  %v652_v61 = vsel %vm646_vm10, %v639_v48, 920167782  ;;  %v775_v63 = vadd.s32 %v774_v42, %v770_v30  ;;  %v647_v6 = vsel %vm643_vm6, %v627_v24, %v630_v25 }
  0xf3   : > { %v653_v10 = vsel %vm645_vm9, %v636_v31, %v652_v61  ;;  %v656_v11 = vsel %vm646_vm10, %v642_v54, 1326507024  ;;  %v649_v14 = vsel %vm645_vm9, %v633_v19, %v648_v21  ;;  %vm934_vm11 = vcmp.gt.s32.totalorder %v3136_v58, 0 }
  0xf4   : > { %v654_v15 = vsel %vm644_vm8, %v651_v22, %v653_v10  ;;  %v657_v20 = vsel %vm645_vm9, %v639_v48, %v656_v11  ;;  %v776_v23 = vadd.s32 536870912, %v775_v63  ;;  %v935_v19 = vsel %vm934_vm11, %v3136_v58, 0 }
  0xf5   : > { %v658_v34 = vsel %vm644_vm8, %v655_v55, %v657_v20  ;;  %v3187_v18 = vmul.u32.u64.low %v3129_v46, %v654_v15  ;;  %v3188_v28 = vmul.u32.u64.high %v3129_v46, %v654_v15, %v3187_v18  ;;  %v650_v30 = vsel %vm644_vm8, %v647_v6, %v649_v14 }
  0xf6   : > { %v3192_v25 = vmul.u32.u64.low %v3129_v46, %v658_v34  ;;  %v3193_v24 = vmul.u32.u64.high %v3129_v46, %v658_v34, %v3192_v25  ;;  %v777_v29 = vshrl.u32 %v776_v23, 30  ;;  %v937_v31 = vand.u32 31, %v935_v19 }
  0xf7   : > { %v822_v35 = vand.u32 2139095040, %v3123_v39  ;;  %v669_v48 = vadd.s32 1, %v3188_v28  ;;  %v931_v54 = vor.u32 8388608, %v3133_v47  ;;  %v666_v22 = vmul.u32 %v3129_v46, %v650_v30 }
  0xf8   : > { %v778_v38 = vshll.u32 %v777_v29, 30  ;;  %vm668_vm12 = vc.u32 %v3193_v24, %v3187_v18  ;;  %v938_v42 = vsub.s32 32, %v937_v31  ;;  %v771_v55 = vadd.s32 %v3163_v17, %v3160_v51 }
  0xf9   : > { %v670_v58 = vsel %vm668_vm12, %v669_v48, %v3188_v28  ;;  %v823_v43 = vshrl.u32 %v822_v35, 23  ;;  %v3210_v10 = vshll.u32 %v931_v54, 8  ;;  %v819_v46 = vand.u32 2147483647, %v3123_v39 }
  0xfa   : > { %v3204_v21 = vsub.s32 %v775_v63, %v778_v38  ;;  %v671_v61 = vadd.s32 %v670_v58, %v666_v22  ;;  %v3213_v11 = vshrl.u32 %v935_v19, 5  ;;  %v941_v63 = vshrl.u32 %v4371_v59, %v938_v42 }
  0xfb   : > { %v944_v14 = vshrl.u32 %v4373_v60, %v938_v42  ;;  %v947_v20 = vshrl.u32 %v2773_v62, %v938_v42  ;;  %v950_v23 = vshrl.u32 %v2774_v52, %v938_v42  ;;  %v3220_v51 = vadd.s32 4294967169, %v823_v43 }
  0xfc   : > { %v781_v6 = vsub.s32 0, %v3204_v21  ;;  %v672_v47 = vadd.s32 536870912, %v671_v61  ;;  %v801_v17 = vsub.s32 4, %v777_v29  ;;  %v940_v28 = vshll.u32 %v2770_v49, %v937_v31 }
  0xfd   : > { %v943_v25 = vshll.u32 %v4371_v59, %v937_v31  ;;  %v946_v35 = vshll.u32 %v4373_v60, %v937_v31  ;;  %v949_v38 = vshll.u32 %v2773_v62, %v937_v31  ;;  %v953_v48 = vshrl.u32 %v4375_v53, %v938_v42 }
  0xfe   : > { %v2400_v15 = vmin.u32 %v781_v6, %v3204_v21  ;;  %v3222_v34 = vshrl.u32 %v672_v47, 30  ;;  %v942_v22 = vor.u32 %v941_v63, %v940_v28  ;;  %v3238_v43 = vand.u32 8388607, %v819_v46 }
  0xff   : > { %v945_v58 = vor.u32 %v944_v14, %v943_v25  ;;  %v948_v50 = vor.u32 %v947_v20, %v946_v35  ;;  %v951_v47 = vor.u32 %v950_v23, %v949_v38  ;;  %v952_v59 = vshll.u32 %v2774_v52, %v937_v31 }
 0x100   : > { %v783_v30 = vclz %v2400_v15  ;;  %v674_v54 = vshll.u32 %v3222_v34, 30  ;;  %v802_v15 = vsel %vm717_vm13, %v801_v17, %v777_v29  ;;  %v939_v53 = vshrl.u32 %v2770_v49, %v938_v42 }
 0x101   : > { %vm955_vm15 = vcmp.lt.s32.totalorder %v3213_v11, 1  ;;  %v954_v63 = vor.u32 %v953_v48, %v952_v59  ;;  %vm956_vm1 = vcmp.lt.s32.totalorder %v3213_v11, 2  ;;  %vm957_vm2 = vcmp.lt.s32.totalorder %v3213_v11, 3 }
 0x102   : > { %v2401_v6 = vadd.s32 4294967294, %v783_v30  ;;  %v3243_v60 = vsub.s32 %v671_v61, %v674_v54  ;;  %vm613_vm3 = vcmp.lt.s32.totalorder %v3108_v3, 0  ;;  %vm958_vm4 = vcmp.lt.s32.totalorder %v3213_v11, 4 }
 0x103   : > { %v963_v29 = vsel %vm955_vm15, %v942_v22, %v945_v58  ;;  %v960_v20 = vsel %vm958_vm4, %v948_v50, 2102212464  ;;  %v964_v23 = vsel %vm958_vm4, %v951_v47, 920167782  ;;  %v967_v25 = vsel %vm955_vm15, %v945_v58, %v948_v50 }
 0x104   : > { %vm2402_vm0 = vcmp.lt.s32.totalorder %v2401_v6, 0  ;;  %v677_v31 = vsub.s32 0, %v3243_v60  ;;  %v965_v28 = vsel %vm957_vm2, %v948_v50, %v964_v23  ;;  %v968_v48 = vsel %vm958_vm4, %v954_v63, 1326507024 }
 0x105   : > { %v786_v14 = vsel %vm2402_vm0, 0, %v2401_v6  ;;  %v966_v38 = vsel %vm956_vm1, %v963_v29, %v965_v28  ;;  %v804_v54 = vsel %vm3228_vm14, 0, %v802_v15  ;;  %vm3266_vm5 = vcmp.le.f32.partialorder %v611_v7, 0.7853982 }
 0x106   : > { %v787_v61 = vsub.s32 32, %v786_v14  ;;  %v791_v42 = vsub.s32 4294967266, %v786_v14  ;;  %v788_v59 = vshll.u32 %v3204_v21, %v786_v14  ;;  %v2396_v17 = vmin.u32 %v677_v31, %v3243_v60 }
 0x107   : > { %v959_v14 = vsel %vm955_vm15, %v939_v53, %v942_v22  ;;  %v697_v63 = vsub.s32 4, %v3222_v34  ;;  %v969_v15 = vsel %vm957_vm2, %v951_v47, %v968_v48  ;;  %v808_v23 = vadd.s32 3, %v804_v54 }
 0x108   : > { %v789_v30 = vshrl.u32 %v771_v55, %v787_v61  ;;  %v792_v35 = vadd.s32 127, %v791_v42  ;;  %v679_v6 = vclz %v2396_v17  ;;  %v961_v55 = vsel %vm957_vm2, %v945_v58, %v960_v20 }
 0x109   : > { %v970_v7 = vsel %vm956_vm1, %v967_v25, %v969_v15  ;;  %v3280_v61 = vmul.u32.u64.low %v3210_v10, %v966_v38  ;;  %v3281_v42 = vmul.u32.u64.high %v3210_v10, %v966_v38, %v3280_v61  ;;  %v962_v22 = vsel %vm956_vm1, %v959_v14, %v961_v55  ;;  %v543_v55 = vpop.permute.xlu1 %542 }
 0x10a   : > { %v790_v50 = vor.u32 %v789_v30, %v788_v59  ;;  %v793_v31 = vshll.u32 %v792_v35, 23  ;;  %v2397_v29 = vadd.s32 4294967294, %v679_v6  ;;  %v667_v47 = vadd.s32 %v3187_v18, %v3193_v24 }
 0x10b   : > { %v3287_v58 = vmul.u32.u64.low %v3210_v10, %v970_v7  ;;  %v3288_v20 = vmul.u32.u64.high %v3210_v10, %v970_v7, %v3287_v58  ;;  %v829_v59 = vadd.s32 1, %v3220_v51  ;;  %v698_v30 = vsel %vm613_vm3, %v697_v63, %v3222_v34 }
 0x10c   : > { %v794_v53 = vor.u32 4788187, %v793_v31  ;;  %vm2398_vm6 = vcmp.lt.s32.totalorder %v2397_v29, 0  ;;  %v797_v28 = vcvt.s32.f32 %v790_v50  ;;  %v978_v38 = vmul.u32 %v3210_v10, %v962_v22 }
 0x10d   : > { %v682_v25 = vsel %vm2398_vm6, 0, %v2397_v29  ;;  %v981_v48 = vadd.s32 1, %v3281_v42  ;;  %vm980_vm7 = vc.u32 %v3288_v20, %v3280_v61  ;;  %vm830_vm8 = vcmp.gt.s32.totalorder %v829_v59, 0 }
 0x10e   : > { %v795_v17 = vand.u32 2147483647, %v794_v53  ;;  %v683_v11 = vsub.s32 32, %v682_v25  ;;  %v687_v35 = vsub.s32 4294967266, %v682_v25  ;;  %v684_v6 = vshll.u32 %v3243_v60, %v682_v25 }
 0x10f   : > { %v982_v51 = vsel %vm980_vm7, %v981_v48, %v3281_v42  ;;  %v831_v14 = vsel %vm830_vm8, %v829_v59, 0  ;;  %v700_v50 = vsel %vm3266_vm5, 0, %v698_v30  ;;  %v3307_v53 = vadd.f32 %v543_v55, %v3076_v26 }
 0x110   : > { %v798_v54 = vmul.f32 %v797_v28, %v795_v17  ;;  %v685_v18 = vshrl.u32 %v667_v47, %v683_v11  ;;  %v688_v24 = vadd.s32 127, %v687_v35  ;;  %v983_v10 = vadd.s32 %v982_v51, %v978_v38 }
 0x111   : > { %v833_v31 = vand.u32 31, %v831_v14  ;;  %v3312_v22 = vand.u32 3, %v808_v23  ;;  %v3314_v47 = vadd.s32 3, %v700_v50  ;;  %v827_v17 = vor.u32 8388608, %v3238_v43 }
 0x112   : > { %v799_v34 = vxor.u32 2147483648, %v798_v54  ;;  %v686_v63 = vor.u32 %v685_v18, %v684_v6  ;;  %v689_v15 = vshll.u32 %v688_v24, 23  ;;  %v984_v29 = vadd.s32 536870912, %v983_v10 }
 0x113   : > { %v834_v7 = vsub.s32 32, %v833_v31  ;;  %v4383_v28 = vmov 2475754826   ;;  %v4384_v26 = vmov 2131351028   ;;  %vm925_vm9 = vcmp.lt.s32.totalorder %v3116_v16, 0 }
 0x114   : > { %v800_v60 = vsel %vm717_vm13, %v799_v34, %v798_v54  ;;  %v690_v58 = vor.u32 4788187, %v689_v15  ;;  %v985_v59 = vshrl.u32 %v984_v29, 30  ;;  %v693_v11 = vcvt.s32.f32 %v686_v63 }
 0x115   : > { %v803_v42 = vsel %vm3228_vm14, %v3106_v2, %v800_v60  ;;  %v837_v25 = vshrl.u32 %v4383_v28, %v834_v7  ;;  %v840_v35 = vshrl.u32 %v4384_v26, %v834_v7  ;;  %v3320_v38 = vshrl.u32 %v831_v14, 5 }
 0x116   : > { %2611 = vcosq.f32 %v803_v42  ;;  %v691_v30 = vand.u32 2147483647, %v690_v58  ;;  %v986_v19 = vshll.u32 %v985_v59, 30  ;;  %v836_v23 = vshll.u32 %v2770_v49, %v833_v31 }
 0x117   : > { %2613 = vsinq.f32 %v803_v42  ;;  %v843_v48 = vshrl.u32 %v2773_v62, %v834_v7  ;;  %v839_v6 = vshll.u32 %v4383_v28, %v833_v31  ;;  %v845_v43 = vshll.u32 %v2773_v62, %v833_v31 }
 0x118   : > { %v694_v54 = vmul.f32 %v693_v11, %v691_v30  ;;  %v846_v18 = vshrl.u32 %v2774_v52, %v834_v7  ;;  %v3327_v24 = vsub.s32 %v983_v10, %v986_v19  ;;  %v838_v51 = vor.u32 %v837_v25, %v836_v23 }
 0x119   : > { %v842_v55 = vshll.u32 %v4384_v26, %v833_v31  ;;  %v1134_v34 = vand.u32 2139095040, %v3307_v53  ;;  %v841_v50 = vor.u32 %v840_v35, %v839_v6  ;;  %v4385_v15 = vmov 1326507024  }
 0x11a   : > { %v695_v14 = vxor.u32 2147483648, %v694_v54  ;;  %v847_v63 = vor.u32 %v846_v18, %v845_v43  ;;  %v849_v60 = vshrl.u32 %v4385_v15, %v834_v7  ;;  %v979_v29 = vadd.s32 %v3280_v61, %v3288_v20 }
 0x11b   : > { %v989_v42 = vsub.s32 0, %v3327_v24  ;;  %v844_v58 = vor.u32 %v843_v48, %v842_v55  ;;  %v848_v30 = vshll.u32 %v2774_v52, %v833_v31  ;;  %vm814_vm10 = vcmp.eq.s32.totalorder %v3312_v22, 2 }
 0x11c   : > { %v696_v10 = vsel %vm613_vm3, %v695_v14, %v694_v54  ;;  %v1009_v25 = vsub.s32 4, %v985_v59  ;;  %vm851_vm11 = vcmp.lt.s32.totalorder %v3320_v38, 1  ;;  %v3340_v11 = vshll.u32 %v827_v17, 8 }
 0x11d   : > { %vm811_vm12 = vcmp.eq.s32.totalorder %v3312_v22, 0  ;;  %v699_v61 = vsel %vm3266_vm5, %v3108_v3, %v696_v10  ;;  %v2408_v20 = vmin.u32 %v989_v42, %v3327_v24  ;;  %v850_v31 = vor.u32 %v849_v60, %v848_v30 }
 0x11e   : > { %vm854_vm13 = vcmp.lt.s32.totalorder %v3320_v38, 4  ;;  %vm810_vm14 = vcmp.lt.s32.totalorder %v3312_v22, 2  ;;  %2615 = vcosq.f32 %v699_v61  ;;  %v835_v35 = vshrl.u32 %v2770_v49, %v834_v7 }
 0x11f   : > { %v859_v17 = vsel %vm851_vm11, %v838_v51, %v841_v50  ;;  %v860_v19 = vsel %vm854_vm13, %v847_v63, 920167782  ;;  %vm807_vm15 = vweird.f32 %v3106_v2  ;;  %2617 = vsinq.f32 %v699_v61 }
 0x120   : > { %v4386_v21 = vand.u32 2147483647, %v3116_v16  ;;  %v991_v48 = vclz %v2408_v20  ;;  %vm853_vm1 = vcmp.lt.s32.totalorder %v3320_v38, 3  ;;  %v856_v7 = vsel %vm854_vm13, %v844_v58, 2102212464 }
 0x121   : > { %v1010_v54 = vsel %vm925_vm9, %v1009_v25, %v985_v59  ;;  %vm852_vm2 = vcmp.lt.s32.totalorder %v3320_v38, 2  ;;  %v861_v6 = vsel %vm853_vm1, %v844_v58, %v860_v19  ;;  %v863_v43 = vsel %vm851_vm11, %v841_v50, %v844_v58 }
 0x122   : > { %vm3357_vm0 = vcmp.le.f32.partialorder %v4386_v21, 0.7853982  ;;  %v2409_v18 = vadd.s32 4294967294, %v991_v48  ;;  %v855_v55 = vsel %vm851_vm11, %v835_v35, %v838_v51  ;;  %v862_v14 = vsel %vm852_vm2, %v859_v17, %v861_v6 }
 0x123   : > { %v864_v60 = vsel %vm854_vm13, %v850_v31, 1326507024  ;;  %v2612_v42 = vpop.eup %2611  ;;  %v857_v30 = vsel %vm853_vm1, %v841_v50, %v856_v7  ;;  %v3377_v59 = vmul.u32.u64.low %v3340_v11, %v862_v14  ;;  %v3378_v25 = vmul.u32.u64.high %v3340_v11, %v862_v14, %v3377_v59 }
 0x124   : > { %v865_v10 = vsel %vm853_vm1, %v847_v63, %v864_v60  ;;  %v2614_v61 = vpop.eup %2613  ;;  %v815_v58 = vxor.u32 2147483648, %v2612_v42  ;;  %vm2410_vm3 = vcmp.lt.s32.totalorder %v2409_v18, 0  ;;  %v1135_v20 = vshrl.u32 %v1134_v34, 23 }
 0x125   : > { %v866_v51 = vsel %vm852_vm2, %v863_v43, %v865_v10  ;;  %v812_v35 = vxor.u32 2147483648, %v2614_v61  ;;  %v994_v17 = vsel %vm2410_vm3, 0, %v2409_v18  ;;  %v858_v48 = vsel %vm852_vm2, %v855_v55, %v857_v30 }
 0x126   : > { %v3386_v31 = vmul.u32.u64.low %v3340_v11, %v866_v51  ;;  %v3387_v50 = vmul.u32.u64.high %v3340_v11, %v866_v51, %v3386_v31  ;;  %v816_v63 = vsel %vm814_vm10, %v815_v58, %v2614_v61  ;;  %v995_v19 = vsub.s32 32, %v994_v17 }
 0x127   : > { %v999_v21 = vsub.s32 4294967266, %v994_v17  ;;  %v813_v7 = vsel %vm811_vm12, %v2612_v42, %v812_v35  ;;  %v705_v6 = vand.u32 3, %v3314_v47  ;;  %v877_v34 = vadd.s32 1, %v3378_v25  ;;  %v538_v47 = vpop.permute.xlu0 %537 }
 0x128   : > { %v2415_v43 = vadd.s32 4294967169, %v1135_v20  ;;  %v817_v18 = vsel %vm810_vm14, %v813_v7, %v816_v63  ;;  %v996_v14 = vshll.u32 %v3327_v24, %v994_v17  ;;  %v997_v60 = vshrl.u32 %v979_v29, %v995_v19 }
 0x129   : > { %v1000_v10 = vadd.s32 127, %v999_v21  ;;  %v818_v61 = vsel %vm807_vm15, nan, %v817_v18  ;;  %v1012_v38 = vsel %vm3357_vm0, 0, %v1010_v54  ;;  %v874_v55 = vmul.u32 %v3340_v11, %v858_v48 }
 0x12a   : > { %vm876_vm4 = vc.u32 %v3387_v50, %v3377_v59  ;;  %2276 = vst [vmem:[%s3407_s8 + $0x8] sm:$0xff] %v818_v61  ;;  %v998_v22 = vor.u32 %v997_v60, %v996_v14  ;;  %v1141_v42 = vadd.s32 1, %v2415_v43  ;;  %v1131_v30 = vand.u32 2147483647, %v3307_v53 }
 0x12b   : > { %v1001_v24 = vshll.u32 %v1000_v10, 23  ;;  %v878_v29 = vsel %vm876_vm4, %v877_v34, %v3378_v25  ;;  %v2616_v58 = vpop.eup %2615  ;;  %vm710_vm5 = vcmp.eq.s32.totalorder %v705_v6, 2  ;;  %v3413_v11 = vadd.f32 %v538_v47, %v3078_v27 }
 0x12c   : > { %v879_v2 = vadd.s32 %v878_v29, %v874_v55  ;;  %vm1142_vm6 = vcmp.gt.s32.totalorder %v1141_v42, 0  ;;  %v2618_v51 = vpop.eup %2617  ;;  %v711_v20 = vxor.u32 2147483648, %v2616_v58  ;;  %v1016_v35 = vadd.s32 3, %v1012_v38 }
 0x12d   : > { %v1002_v54 = vor.u32 4788187, %v1001_v24  ;;  %v1143_v31 = vsel %vm1142_vm6, %v1141_v42, 0  ;;  %v708_v63 = vxor.u32 2147483648, %v2618_v51  ;;  %v1005_v21 = vcvt.s32.f32 %v998_v22 }
 0x12e   : > { %v880_v17 = vadd.s32 536870912, %v879_v2  ;;  %v1145_v25 = vand.u32 31, %v1143_v31  ;;  %vm707_vm7 = vcmp.eq.s32.totalorder %v705_v6, 0  ;;  %v712_v48 = vsel %vm710_vm5, %v711_v20, %v2618_v51 }
 0x12f   : > { %v1003_v19 = vand.u32 2147483647, %v1002_v54  ;;  %v1138_v34 = vand.u32 8388607, %v1131_v30  ;;  %vm706_vm8 = vcmp.lt.s32.totalorder %v705_v6, 2  ;;  %v709_v27 = vsel %vm707_vm7, %v2616_v58, %v708_v63 }
 0x130   : > { %v3415_v7 = vshrl.u32 %v880_v17, 30  ;;  %v1146_v18 = vsub.s32 32, %v1145_v25  ;;  %vm703_vm10 = vweird.f32 %v3108_v3  ;;  %v713_v14 = vsel %vm706_vm8, %v709_v27, %v712_v48 }
 0x131   : > { %v1006_v43 = vmul.f32 %v1005_v21, %v1003_v19  ;;  %v714_v10 = vsel %vm703_vm10, nan, %v713_v14  ;;  %v3421_v38 = vand.u32 3, %v1016_v35  ;;  %v1139_v22 = vor.u32 8388608, %v1138_v34 }
 0x132   : > { %v882_v60 = vshll.u32 %v3415_v7, 30  ;;  %v1149_v55 = vshrl.u32 %v4383_v28, %v1146_v18  ;;  %2275 = vst [vmem:[%s3407_s8] sm:$0xff] %v714_v10  ;;  %v1152_v6 = vshrl.u32 %v4384_v26, %v1146_v18  ;;  %v1030_v24 = vand.u32 2139095040, %v3413_v11 }
 0x133   : > { %v1007_v61 = vxor.u32 2147483648, %v1006_v43  ;;  %v1144_v29 = vshrl.u32 %v1143_v31, 5  ;;  %v1148_v42 = vshll.u32 %v2770_v49, %v1145_v25  ;;  %v1155_v58 = vshrl.u32 %v2773_v62, %v1146_v18 }
 0x134   : > { %v3425_v47 = vsub.s32 %v879_v2, %v882_v60  ;;  %v1151_v51 = vshll.u32 %v4383_v28, %v1145_v25  ;;  %v1154_v20 = vshll.u32 %v4384_v26, %v1145_v25  ;;  %v1157_v17 = vshll.u32 %v2773_v62, %v1145_v25 }
 0x135   : > { %v1008_v3 = vsel %vm925_vm9, %v1007_v61, %v1006_v43  ;;  %v1150_v35 = vor.u32 %v1149_v55, %v1148_v42  ;;  %v1158_v31 = vshrl.u32 %v2774_v52, %v1146_v18  ;;  %v1160_v23 = vshll.u32 %v2774_v52, %v1145_v25 }
 0x136   : > { %v1011_v54 = vsel %vm3357_vm0, %v3116_v16, %v1008_v3  ;;  %v885_v2 = vsub.s32 0, %v3425_v47  ;;  %v1153_v19 = vor.u32 %v1152_v6, %v1151_v51  ;;  %v1156_v21 = vor.u32 %v1155_v58, %v1154_v20 }
 0x137   : > { %2619 = vcosq.f32 %v1011_v54  ;;  %v1159_v48 = vor.u32 %v1158_v31, %v1157_v17  ;;  %v1161_v34 = vshrl.u32 %v4385_v15, %v1146_v18  ;;  %v1179_v27 = vshll.u32 %v1139_v22, 8 }
 0x138   : > { %2621 = vsinq.f32 %v1011_v54  ;;  %v2404_v63 = vmin.u32 %v885_v2, %v3425_v47  ;;  %v1147_v14 = vshrl.u32 %v2770_v49, %v1146_v18  ;;  %vm1163_vm9 = vcmp.lt.s32.totalorder %v1144_v29, 1 }
 0x139   : > { %v1031_v60 = vshrl.u32 %v1030_v24, 23  ;;  %vm821_vm11 = vcmp.lt.s32.totalorder %v3123_v39, 0  ;;  %v1162_v10 = vor.u32 %v1161_v34, %v1160_v23  ;;  %vm1164_vm12 = vcmp.lt.s32.totalorder %v1144_v29, 2 }
 0x13a   : > { %v887_v43 = vclz %v2404_v63  ;;  %vm1165_vm13 = vcmp.lt.s32.totalorder %v1144_v29, 3  ;;  %vm1166_vm14 = vcmp.lt.s32.totalorder %v1144_v29, 4  ;;  %v1171_v6 = vsel %vm1163_vm9, %v1150_v35, %v1153_v19 }
 0x13b   : > { %v1168_v55 = vsel %vm1166_vm14, %v1156_v21, 2102212464  ;;  %v1172_v3 = vsel %vm1166_vm14, %v1159_v48, 920167782  ;;  %v1167_v42 = vsel %vm1163_vm9, %v1147_v14, %v1150_v35  ;;  %v1175_v58 = vsel %vm1163_vm9, %v1153_v19, %v1156_v21 }
 0x13c   : > { %v2405_v61 = vadd.s32 4294967294, %v887_v43  ;;  %v1173_v25 = vsel %vm1165_vm13, %v1156_v21, %v1172_v3  ;;  %v1176_v54 = vsel %vm1166_vm14, %v1162_v10, 1326507024  ;;  %vm3448_vm15 = vcmp.le.f32.partialorder %v819_v46, 0.7853982 }
 0x13d   : > { %v1169_v22 = vsel %vm1165_vm13, %v1153_v19, %v1168_v55  ;;  %v1174_v24 = vsel %vm1164_vm12, %v1171_v6, %v1173_v25  ;;  %v1177_v2 = vsel %vm1165_vm13, %v1159_v48, %v1176_v54  ;;  %v875_v35 = vadd.s32 %v3377_v59, %v3387_v50 }
 0x13e   : > { %vm2406_vm0 = vcmp.lt.s32.totalorder %v2405_v61, 0  ;;  %v1178_v20 = vsel %vm1164_vm12, %v1175_v58, %v1177_v2  ;;  %v3454_v17 = vmul.u32.u64.low %v1179_v27, %v1174_v24  ;;  %v3455_v31 = vmul.u32.u64.high %v1179_v27, %v1174_v24, %v3454_v17 }
 0x13f   : > { %v890_v51 = vsel %vm2406_vm0, 0, %v2405_v61  ;;  %v905_v21 = vsub.s32 4, %v3415_v7  ;;  %v3461_v23 = vmul.u32.u64.low %v1179_v27, %v1178_v20  ;;  %v3462_v34 = vmul.u32.u64.high %v1179_v27, %v1178_v20, %v3461_v23 }
 0x140   : > { %v891_v63 = vsub.s32 32, %v890_v51  ;;  %v895_v46 = vsub.s32 4294967266, %v890_v51  ;;  %v1027_v19 = vand.u32 2147483647, %v3413_v11  ;;  %v2411_v48 = vadd.s32 4294967169, %v1031_v60 }
 0x141   : > { %v892_v43 = vshll.u32 %v3425_v47, %v890_v51  ;;  %v1170_v61 = vsel %vm1164_vm12, %v1167_v42, %v1169_v22  ;;  %vm1018_vm1 = vcmp.lt.s32.totalorder %v3421_v38, 2  ;;  %vm1019_vm2 = vcmp.eq.s32.totalorder %v3421_v38, 0 }
 0x142   : > { %v893_v14 = vshrl.u32 %v875_v35, %v891_v63  ;;  %v896_v10 = vadd.s32 127, %v895_v46  ;;  %v1189_v59 = vadd.s32 1, %v3455_v31  ;;  %v1037_v50 = vadd.s32 1, %v2411_v48  ;;  %v553_v46 = vpop.permute.xlu1 %552 }
 0x143   : > { %vm1022_vm3 = vcmp.eq.s32.totalorder %v3421_v38, 2  ;;  %v906_v47 = vsel %vm821_vm11, %v905_v21, %v3415_v7  ;;  %v1186_v29 = vmul.u32 %v1179_v27, %v1170_v61  ;;  %vm1188_vm4 = vc.u32 %v3462_v34, %v3454_v17 }
 0x144   : > { %v2620_v55 = vpop.eup %2619  ;;  %v894_v6 = vor.u32 %v893_v14, %v892_v43  ;;  %v897_v3 = vshll.u32 %v896_v10, 23  ;;  %vm1038_vm5 = vcmp.gt.s32.totalorder %v1037_v50, 0  ;;  %v1190_v54 = vsel %vm1188_vm4, %v1189_v59, %v3455_v31 }
 0x145   : > { %v2622_v60 = vpop.eup %2621  ;;  %v1023_v25 = vxor.u32 2147483648, %v2620_v55  ;;  %v1034_v22 = vand.u32 8388607, %v1027_v19  ;;  %v908_v2 = vsel %vm3448_vm15, 0, %v906_v47  ;;  %v1191_v7 = vadd.s32 %v1190_v54, %v1186_v29 }
 0x146   : > { %v1020_v42 = vxor.u32 2147483648, %v2622_v60  ;;  %v898_v58 = vor.u32 4788187, %v897_v3  ;;  %v1039_v51 = vsel %vm1038_vm5, %v1037_v50, 0  ;;  %v901_v35 = vcvt.s32.f32 %v894_v6 }
 0x147   : > { %v1024_v24 = vsel %vm1022_vm3, %v1023_v25, %v2622_v60  ;;  %v1041_v63 = vand.u32 31, %v1039_v51  ;;  %vm1015_vm6 = vweird.f32 %v3116_v16  ;;  %v1192_v21 = vadd.s32 536870912, %v1191_v7 }
 0x148   : > { %v1021_v27 = vsel %vm1019_vm2, %v2620_v55, %v1020_v42  ;;  %v899_v20 = vand.u32 2147483647, %v898_v58  ;;  %v912_v43 = vadd.s32 3, %v908_v2  ;;  %v1035_v61 = vor.u32 8388608, %v1034_v22 }
 0x149   : > { %v1025_v31 = vsel %vm1018_vm1, %v1021_v27, %v1024_v24  ;;  %v1042_v14 = vsub.s32 32, %v1041_v63  ;;  %v3487_v10 = vshrl.u32 %v1192_v21, 30  ;;  %v1044_v59 = vshll.u32 %v2770_v49, %v1041_v63 }
 0x14a   : > { %v1026_v23 = vsel %vm1015_vm6, nan, %v1025_v31  ;;  %v902_v48 = vmul.f32 %v901_v35, %v899_v20  ;;  %v3491_v50 = vadd.f32 %v553_v46, %v3080_v32  ;;  %v1047_v38 = vshll.u32 %v4383_v28, %v1041_v63 }
 0x14b   : > { %2278 = vst [vmem:[%s3407_s8 + $0x18] sm:$0xff] %v1026_v23  ;;  %v1045_v16 = vshrl.u32 %v4383_v28, %v1042_v14  ;;  %v1048_v6 = vshrl.u32 %v4384_v26, %v1042_v14  ;;  %v1194_v3 = vshll.u32 %v3487_v10, 30  ;;  %v1050_v47 = vshll.u32 %v4384_v26, %v1041_v63 }
 0x14c   : > { %v903_v55 = vxor.u32 2147483648, %v902_v48  ;;  %v1051_v60 = vshrl.u32 %v2773_v62, %v1042_v14  ;;  %v1054_v25 = vshrl.u32 %v2774_v52, %v1042_v14  ;;  %v1040_v32 = vshrl.u32 %v1039_v51, 5 }
 0x14d   : > { %v1046_v42 = vor.u32 %v1045_v16, %v1044_v59  ;;  %v1053_v58 = vshll.u32 %v2773_v62, %v1041_v63  ;;  %v3506_v22 = vsub.s32 %v1191_v7, %v1194_v3  ;;  %v1049_v24 = vor.u32 %v1048_v6, %v1047_v38 }
 0x14e   : > { %v904_v29 = vsel %vm821_vm11, %v903_v55, %v902_v48  ;;  %v1052_v2 = vor.u32 %v1051_v60, %v1050_v47  ;;  %v1056_v20 = vshll.u32 %v2774_v52, %v1041_v63  ;;  %v1057_v35 = vshrl.u32 %v4385_v15, %v1042_v14 }
 0x14f   : > { %v907_v54 = vsel %vm3448_vm15, %v3123_v39, %v904_v29  ;;  %v1055_v27 = vor.u32 %v1054_v25, %v1053_v58  ;;  %v1197_v51 = vsub.s32 0, %v3506_v22  ;;  %v3511_v46 = vand.u32 3, %v912_v43 }
 0x150   : > { %2623 = vcosq.f32 %v907_v54  ;;  %v1058_v31 = vor.u32 %v1057_v35, %v1056_v20  ;;  %vm1062_vm7 = vcmp.lt.s32.totalorder %v1040_v32, 4  ;;  %v1342_v18 = vand.u32 2139095040, %v3491_v50 }
 0x151   : > { %2625 = vsinq.f32 %v907_v54  ;;  %v2416_v7 = vmin.u32 %v1197_v51, %v3506_v22  ;;  %v1043_v21 = vshrl.u32 %v2770_v49, %v1042_v14  ;;  %vm1059_vm8 = vcmp.lt.s32.totalorder %v1040_v32, 1 }
 0x152   : > { %v1064_v23 = vsel %vm1062_vm7, %v1052_v2, 2102212464  ;;  %vm1060_vm10 = vcmp.lt.s32.totalorder %v1040_v32, 2  ;;  %v1067_v63 = vsel %vm1059_vm8, %v1046_v42, %v1049_v24  ;;  %v1068_v48 = vsel %vm1062_vm7, %v1055_v27, 920167782 }
 0x153   : > { %v1075_v59 = vshll.u32 %v1035_v61, 8  ;;  %vm1133_vm9 = vcmp.lt.s32.totalorder %v3307_v53, 0  ;;  %v1199_v43 = vclz %v2416_v7  ;;  %vm1061_vm11 = vcmp.lt.s32.totalorder %v1040_v32, 3 }
 0x154   : > { %v1063_v55 = vsel %vm1059_vm8, %v1043_v21, %v1046_v42  ;;  %v1071_v16 = vsel %vm1059_vm8, %v1049_v24, %v1052_v2  ;;  %v1065_v38 = vsel %vm1061_vm11, %v1049_v24, %v1064_v23  ;;  %v1069_v6 = vsel %vm1061_vm11, %v1052_v2, %v1068_v48 }
 0x155   : > { %v1072_v3 = vsel %vm1062_vm7, %v1058_v31, 1326507024  ;;  %v1343_v47 = vshrl.u32 %v1342_v18, 23  ;;  %v2417_v14 = vadd.s32 4294967294, %v1199_v43  ;;  %v1070_v60 = vsel %vm1060_vm10, %v1067_v63, %v1069_v6 }
 0x156   : > { %v1073_v25 = vsel %vm1061_vm11, %v1055_v27, %v1072_v3  ;;  %v1339_v29 = vand.u32 2147483647, %v3491_v50  ;;  %v3523_v61 = vmul.u32.u64.low %v1075_v59, %v1070_v60  ;;  %v3524_v54 = vmul.u32.u64.high %v1075_v59, %v1070_v60, %v3523_v61 }
 0x157   : > { %v1074_v58 = vsel %vm1060_vm10, %v1071_v16, %v1073_v25  ;;  %v2423_v20 = vadd.s32 4294967169, %v1343_v47  ;;  %vm2418_vm12 = vcmp.lt.s32.totalorder %v2417_v14, 0  ;;  %v1066_v42 = vsel %vm1060_vm10, %v1063_v55, %v1065_v38  ;;  %v548_v16 = vpop.permute.xlu0 %547 }
 0x158   : > { %v3528_v24 = vmul.u32.u64.low %v1075_v59, %v1074_v58  ;;  %v3529_v2 = vmul.u32.u64.high %v1075_v59, %v1074_v58, %v3528_v24  ;;  %vm911_vm13 = vweird.f32 %v3123_v39  ;;  %vm3534_vm14 = vcmp.le.f32.partialorder %v1131_v30, 0.7853982 }
 0x159   : > { %v1202_v35 = vsel %vm2418_vm12, 0, %v2417_v14  ;;  %v1217_v51 = vsub.s32 4, %v3487_v10  ;;  %v1349_v31 = vadd.s32 1, %v2423_v20  ;;  %vm918_vm15 = vcmp.eq.s32.totalorder %v3511_v46, 2 }
 0x15a   : > { %v1187_v32 = vadd.s32 %v3454_v17, %v3462_v34  ;;  %v1203_v18 = vsub.s32 32, %v1202_v35  ;;  %v1207_v7 = vsub.s32 4294967266, %v1202_v35  ;;  %v1082_v21 = vmul.u32 %v1075_v59, %v1066_v42 }
 0x15b   : > { %v1085_v23 = vadd.s32 1, %v3524_v54  ;;  %v1346_v30 = vand.u32 8388607, %v1339_v29  ;;  %vm1350_vm0 = vcmp.gt.s32.totalorder %v1349_v31, 0  ;;  %v1204_v48 = vshll.u32 %v3506_v22, %v1202_v35 }
 0x15c   : > { %v1205_v43 = vshrl.u32 %v1187_v32, %v1203_v18  ;;  %v1208_v55 = vadd.s32 127, %v1207_v7  ;;  %vm1084_vm1 = vc.u32 %v3529_v2, %v3523_v61  ;;  %v1218_v34 = vsel %vm1133_vm9, %v1217_v51, %v3487_v10 }
 0x15d   : > { %v2624_v63 = vpop.eup %2623  ;;  %v1086_v59 = vsel %vm1084_vm1, %v1085_v23, %v3524_v54  ;;  %v1351_v6 = vsel %vm1350_vm0, %v1349_v31, 0  ;;  %vm915_vm2 = vcmp.eq.s32.totalorder %v3511_v46, 0  ;;  %v3556_v58 = vadd.f32 %v548_v16, %v3082_v33 }
 0x15e   : > { %v2626_v38 = vpop.eup %2625  ;;  %v919_v17 = vxor.u32 2147483648, %v2624_v63  ;;  %v1206_v47 = vor.u32 %v1205_v43, %v1204_v48  ;;  %v1209_v14 = vshll.u32 %v1208_v55, 23  ;;  %v1087_v60 = vadd.s32 %v1086_v59, %v1082_v21 }
 0x15f   : > { %v916_v3 = vxor.u32 2147483648, %v2626_v38  ;;  %v1353_v25 = vand.u32 31, %v1351_v6  ;;  %vm914_vm3 = vcmp.lt.s32.totalorder %v3511_v46, 2  ;;  %v1220_v24 = vsel %vm3534_vm14, 0, %v1218_v34 }
 0x160   : > { %v920_v22 = vsel %vm918_vm15, %v919_v17, %v2626_v38  ;;  %v1210_v20 = vor.u32 4788187, %v1209_v14  ;;  %v1088_v54 = vadd.s32 536870912, %v1087_v60  ;;  %v1347_v35 = vor.u32 8388608, %v1346_v30 }
 0x161   : > { %v917_v10 = vsel %vm915_vm2, %v2624_v63, %v916_v3  ;;  %v1354_v51 = vsub.s32 32, %v1353_v25  ;;  %v1213_v18 = vcvt.s32.f32 %v1206_v47  ;;  %v1238_v23 = vand.u32 2139095040, %v3556_v58 }
 0x162   : > { %v921_v42 = vsel %vm914_vm3, %v917_v10, %v920_v22  ;;  %v1211_v32 = vand.u32 2147483647, %v1210_v20  ;;  %v3563_v7 = vshrl.u32 %v1088_v54, 30  ;;  %v1356_v48 = vshll.u32 %v2770_v49, %v1353_v25 }
 0x163   : > { %v922_v31 = vsel %vm911_vm13, nan, %v921_v42  ;;  %v1357_v33 = vshrl.u32 %v4383_v28, %v1354_v51  ;;  %v1360_v46 = vshrl.u32 %v4384_v26, %v1354_v51  ;;  %v1363_v21 = vshrl.u32 %v2773_v62, %v1354_v51 }
 0x164   : > { %2277 = vst [vmem:[%s3407_s8 + $0x10] sm:$0xff] %v922_v31  ;;  %v1214_v63 = vmul.f32 %v1213_v18, %v1211_v32  ;;  %v1090_v30 = vshll.u32 %v3563_v7, 30  ;;  %v1359_v39 = vshll.u32 %v4383_v28, %v1353_v25  ;;  %v1352_v43 = vshrl.u32 %v1351_v6, 5 }
 0x165   : > { %v1362_v55 = vshll.u32 %v4384_v26, %v1353_v25  ;;  %v1365_v16 = vshll.u32 %v2773_v62, %v1353_v25  ;;  %v1366_v38 = vshrl.u32 %v2774_v52, %v1354_v51  ;;  %v1358_v59 = vor.u32 %v1357_v33, %v1356_v48 }
 0x166   : > { %v1215_v17 = vxor.u32 2147483648, %v1214_v63  ;;  %v3576_v34 = vsub.s32 %v1087_v60, %v1090_v30  ;;  %v1361_v3 = vor.u32 %v1360_v46, %v1359_v39  ;;  %v1368_v22 = vshll.u32 %v2774_v52, %v1353_v25 }
 0x167   : > { %v1364_v47 = vor.u32 %v1363_v21, %v1362_v55  ;;  %v1367_v14 = vor.u32 %v1366_v38, %v1365_v16  ;;  %v1369_v10 = vshrl.u32 %v4385_v15, %v1354_v51  ;;  %v1224_v20 = vadd.s32 3, %v1220_v24 }
 0x168   : > { %v1216_v6 = vsel %vm1133_vm9, %v1215_v17, %v1214_v63  ;;  %v1093_v54 = vsub.s32 0, %v3576_v34  ;;  %v1387_v42 = vshll.u32 %v1347_v35, 8  ;;  %vm1029_vm4 = vcmp.lt.s32.totalorder %v3413_v11, 0 }
 0x169   : > { %v1219_v60 = vsel %vm3534_vm14, %v3307_v53, %v1216_v6  ;;  %v1355_v31 = vshrl.u32 %v2770_v49, %v1354_v51  ;;  %v1370_v32 = vor.u32 %v1369_v10, %v1368_v22  ;;  %v1239_v18 = vshrl.u32 %v1238_v23, 23 }
 0x16a   : > { %2627 = vcosq.f32 %v1219_v60  ;;  %v2412_v25 = vmin.u32 %v1093_v54, %v3576_v34  ;;  %vm1371_vm5 = vcmp.lt.s32.totalorder %v1352_v43, 1  ;;  %vm1374_vm6 = vcmp.lt.s32.totalorder %v1352_v43, 4 }
 0x16b   : > { %2629 = vsinq.f32 %v1219_v60  ;;  %v1376_v24 = vsel %vm1374_vm6, %v1364_v47, 2102212464  ;;  %v1379_v33 = vsel %vm1371_vm5, %v1358_v59, %v1361_v3  ;;  %v1380_v46 = vsel %vm1374_vm6, %v1367_v14, 920167782 }
 0x16c   : > { %vm3591_vm7 = vcmp.le.f32.partialorder %v1027_v19, 0.7853982  ;;  %v1095_v35 = vclz %v2412_v25  ;;  %vm1372_vm8 = vcmp.lt.s32.totalorder %v1352_v43, 2  ;;  %vm1373_vm10 = vcmp.lt.s32.totalorder %v1352_v43, 3 }
 0x16d   : > { %v1375_v51 = vsel %vm1371_vm5, %v1355_v31, %v1358_v59  ;;  %v1377_v21 = vsel %vm1373_vm10, %v1361_v3, %v1376_v24  ;;  %v1381_v23 = vsel %vm1373_vm10, %v1364_v47, %v1380_v46  ;;  %v1383_v63 = vsel %vm1371_vm5, %v1361_v3, %v1364_v47 }
 0x16e   : > { %v1384_v30 = vsel %vm1374_vm6, %v1370_v32, 1326507024  ;;  %v2413_v48 = vadd.s32 4294967294, %v1095_v35  ;;  %v1113_v39 = vsub.s32 4, %v3563_v7  ;;  %v1382_v55 = vsel %vm1372_vm8, %v1379_v33, %v1381_v23 }
 0x16f   : > { %v1385_v16 = vsel %vm1373_vm10, %v1367_v14, %v1384_v30  ;;  %v1378_v38 = vsel %vm1372_vm8, %v1375_v51, %v1377_v21  ;;  %v3596_v22 = vmul.u32.u64.low %v1387_v42, %v1382_v55  ;;  %v3597_v19 = vmul.u32.u64.high %v1387_v42, %v1382_v55, %v3596_v22  ;;  %v563_v30 = vpop.permute.xlu1 %562 }
 0x170   : > { %v1386_v17 = vsel %vm1372_vm8, %v1383_v63, %v1385_v16  ;;  %vm2414_vm9 = vcmp.lt.s32.totalorder %v2413_v48, 0  ;;  %v2419_v43 = vadd.s32 4294967169, %v1239_v18  ;;  %v1225_v59 = vand.u32 3, %v1224_v20 }
 0x171   : > { %v3599_v10 = vmul.u32.u64.low %v1387_v42, %v1386_v17  ;;  %v3600_v6 = vmul.u32.u64.high %v1387_v42, %v1386_v17, %v3599_v10  ;;  %v1083_v3 = vadd.s32 %v3523_v61, %v3529_v2  ;;  %v1098_v47 = vsel %vm2414_vm9, 0, %v2413_v48 }
 0x172   : > { %v492_v54 = vadd.f32 %v3084_v36, %v3046_v0  ;;  %v1099_v60 = vsub.s32 32, %v1098_v47  ;;  %v1103_v14 = vsub.s32 4294967266, %v1098_v47  ;;  %v1114_v31 = vsel %vm1029_vm4, %v1113_v39, %v3563_v7 }
 0x173   : > { %v1245_v32 = vadd.s32 1, %v2419_v43  ;;  %v1394_v25 = vmul.u32 %v1387_v42, %v1378_v38  ;;  %v1397_v24 = vadd.s32 1, %v3597_v19  ;;  %v1235_v18 = vand.u32 2147483647, %v3556_v58 }
 0x174   : > { %v3613_v20 = vadd.f32 %v3086_v37, %v3049_v1  ;;  %v1100_v61 = vshll.u32 %v3576_v34, %v1098_v47  ;;  %v1101_v2 = vshrl.u32 %v1083_v3, %v1099_v60  ;;  %v1104_v0 = vadd.s32 127, %v1103_v14 }
 0x175   : > { %vm1396_vm11 = vc.u32 %v3600_v6, %v3596_v22  ;;  %v1116_v36 = vsel %vm3591_vm7, 0, %v1114_v31  ;;  %vm1246_vm12 = vcmp.gt.s32.totalorder %v1245_v32, 0  ;;  %vm1223_vm13 = vweird.f32 %v3307_v53 }
 0x176   : > { %v1398_v7 = vsel %vm1396_vm11, %v1397_v24, %v3597_v19  ;;  %v1102_v42 = vor.u32 %v1101_v2, %v1100_v61  ;;  %v1105_v33 = vshll.u32 %v1104_v0, 23  ;;  %v1247_v35 = vsel %vm1246_vm12, %v1245_v32, 0 }
 0x177   : > { %v1399_v46 = vadd.s32 %v1398_v7, %v1394_v25  ;;  %v2628_v51 = vpop.eup %2627  ;;  %vm1226_vm14 = vcmp.lt.s32.totalorder %v1225_v59, 2  ;;  %v1242_v1 = vand.u32 8388607, %v1235_v18  ;;  %v1249_v37 = vand.u32 31, %v1247_v35 }
 0x178   : > { %v2630_v34 = vpop.eup %2629  ;;  %vm1227_vm15 = vcmp.eq.s32.totalorder %v1225_v59, 0  ;;  %v1231_v21 = vxor.u32 2147483648, %v2628_v51  ;;  %v1106_v23 = vor.u32 4788187, %v1105_v33  ;;  %vm1230_vm0 = vcmp.eq.s32.totalorder %v1225_v59, 2 }
 0x179   : > { %v1400_v63 = vadd.s32 536870912, %v1399_v46  ;;  %v1228_v48 = vxor.u32 2147483648, %v2630_v34  ;;  %v3623_v39 = vadd.s32 3, %v1116_v36  ;;  %v1250_v55 = vsub.s32 32, %v1249_v37 }
 0x17a   : > { %v1232_v16 = vsel %vm1230_vm0, %v1231_v21, %v2630_v34  ;;  %v1107_v38 = vand.u32 2147483647, %v1106_v23  ;;  %v1109_v17 = vcvt.s32.f32 %v1102_v42  ;;  %v1243_v43 = vor.u32 8388608, %v1242_v1 }
 0x17b   : > { %v1401_v19 = vshrl.u32 %v1400_v63, 30  ;;  %v1229_v10 = vsel %vm1227_vm15, %v2628_v51, %v1228_v48  ;;  %v1253_v3 = vshrl.u32 %v4383_v28, %v1250_v55  ;;  %v3626_v47 = vadd.f32 %v563_v30, %v492_v54 }
 0x17c   : > { %v1233_v60 = vsel %vm1226_vm14, %v1229_v10, %v1232_v16  ;;  %v1110_v14 = vmul.f32 %v1109_v17, %v1107_v38  ;;  %v3630_v31 = vadd.s32 %v3596_v22, %v3600_v6  ;;  %v1252_v24 = vshll.u32 %v2770_v49, %v1249_v37 }
 0x17d   : > { %v1402_v32 = vshll.u32 %v1401_v19, 30  ;;  %v1234_v25 = vsel %vm1223_vm13, nan, %v1233_v60  ;;  %v1256_v61 = vshrl.u32 %v4384_v26, %v1250_v55  ;;  %v1259_v2 = vshrl.u32 %v2773_v62, %v1250_v55 }
 0x17e   : > { %2280 = vst [vmem:[%s3407_s8 + $0x28] sm:$0xff] %v1234_v25  ;;  %v1111_v0 = vxor.u32 2147483648, %v1110_v14  ;;  %v1248_v59 = vshrl.u32 %v1247_v35, 5  ;;  %v1255_v36 = vshll.u32 %v4383_v28, %v1249_v37  ;;  %v1254_v7 = vor.u32 %v1253_v3, %v1252_v24 }
 0x17f   : > { %v3638_v54 = vsub.s32 %v1399_v46, %v1402_v32  ;;  %v1258_v22 = vshll.u32 %v4384_v26, %v1249_v37  ;;  %v1261_v6 = vshll.u32 %v2773_v62, %v1249_v37  ;;  %v1262_v53 = vshrl.u32 %v2774_v52, %v1250_v55 }
 0x180   : > { %v1112_v42 = vsel %vm1029_vm4, %v1111_v0, %v1110_v14  ;;  %vm1341_vm1 = vcmp.lt.s32.totalorder %v3491_v50, 0  ;;  %v1264_v46 = vshll.u32 %v2774_v52, %v1249_v37  ;;  %v1265_v35 = vshrl.u32 %v4385_v15, %v1250_v55 }
 0x181   : > { %v1405_v33 = vsub.s32 0, %v3638_v54  ;;  %v1115_v51 = vsel %vm3591_vm7, %v3413_v11, %v1112_v42  ;;  %v1257_v1 = vor.u32 %v1256_v61, %v1255_v36  ;;  %v1260_v34 = vor.u32 %v1259_v2, %v1258_v22 }
 0x182   : > { %v1263_v21 = vor.u32 %v1262_v53, %v1261_v6  ;;  %2631 = vcosq.f32 %v1115_v51  ;;  %v1266_v63 = vor.u32 %v1265_v35, %v1264_v46  ;;  %v1283_v30 = vshll.u32 %v1243_v43, 8 }
 0x183   : > { %v2424_v23 = vmin.u32 %v1405_v33, %v3638_v54  ;;  %2633 = vsinq.f32 %v1115_v51  ;;  %v1425_v48 = vsub.s32 4, %v1401_v19  ;;  %v1251_v16 = vshrl.u32 %v2770_v49, %v1250_v55 }
 0x184   : > { %vm1267_vm2 = vcmp.lt.s32.totalorder %v1248_v59, 1  ;;  %vm1268_vm3 = vcmp.lt.s32.totalorder %v1248_v59, 2  ;;  %vm1269_vm4 = vcmp.lt.s32.totalorder %v1248_v59, 3  ;;  %vm1270_vm5 = vcmp.lt.s32.totalorder %v1248_v59, 4 }
 0x185   : > { %v1407_v37 = vclz %v2424_v23  ;;  %v1272_v38 = vsel %vm1270_vm5, %v1260_v34, 2102212464  ;;  %v1275_v27 = vsel %vm1267_vm2, %v1254_v7, %v1257_v1  ;;  %v1276_v17 = vsel %vm1270_vm5, %v1263_v21, 920167782 }
 0x186   : > { %v1279_v10 = vsel %vm1267_vm2, %v1257_v1, %v1260_v34  ;;  %v1271_v60 = vsel %vm1267_vm2, %v1251_v16, %v1254_v7  ;;  %v1277_v14 = vsel %vm1269_vm4, %v1260_v34, %v1276_v17  ;;  %v1280_v32 = vsel %vm1270_vm5, %v1266_v63, 1326507024 }
 0x187   : > { %v2425_v3 = vadd.s32 4294967294, %v1407_v37  ;;  %v1273_v25 = vsel %vm1269_vm4, %v1257_v1, %v1272_v38  ;;  %v1278_v43 = vsel %vm1268_vm3, %v1275_v27, %v1277_v14  ;;  %v1281_v24 = vsel %vm1269_vm4, %v1263_v21, %v1280_v32 }
 0x188   : > { %v1550_v61 = vand.u32 2139095040, %v3626_v47  ;;  %v1282_v55 = vsel %vm1268_vm3, %v1279_v10, %v1281_v24  ;;  %v3658_v2 = vmul.u32.u64.low %v1283_v30, %v1278_v43  ;;  %v3659_v0 = vmul.u32.u64.high %v1283_v30, %v1278_v43, %v3658_v2 }
 0x189   : > { %vm2426_vm6 = vcmp.lt.s32.totalorder %v2425_v3, 0  ;;  %v1426_v22 = vsel %vm1341_vm1, %v1425_v48, %v1401_v19  ;;  %v3664_v7 = vmul.u32.u64.low %v1283_v30, %v1282_v55  ;;  %v3665_v6 = vmul.u32.u64.high %v1283_v30, %v1282_v55, %v3664_v7 }
 0x18a   : > { %v1410_v36 = vsel %vm2426_vm6, 0, %v2425_v3  ;;  %v1274_v33 = vsel %vm1268_vm3, %v1271_v60, %v1273_v25  ;;  %v1551_v46 = vshrl.u32 %v1550_v61, 23  ;;  %v1121_v35 = vand.u32 3, %v3623_v39  ;;  %v558_v60 = vpop.permute.xlu0 %557 }
 0x18b   : > { %v1411_v53 = vsub.s32 32, %v1410_v36  ;;  %v1415_v42 = vsub.s32 4294967266, %v1410_v36  ;;  %vm3671_vm7 = vcmp.le.f32.partialorder %v1339_v29, 0.7853982  ;;  %v1412_v1 = vshll.u32 %v3638_v54, %v1410_v36 }
 0x18c   : > { %v3678_v19 = vadd.f32 %v3088_v40, %v3052_v4  ;;  %v1293_v59 = vadd.s32 1, %v3659_v0  ;;  %v2431_v23 = vadd.s32 4294967169, %v1551_v46  ;;  %v1428_v39 = vsel %vm3671_vm7, 0, %v1426_v22 }
 0x18d   : > { %v1413_v34 = vshrl.u32 %v3630_v31, %v1411_v53  ;;  %v1416_v21 = vadd.s32 127, %v1415_v42  ;;  %v1290_v63 = vmul.u32 %v1283_v30, %v1274_v33  ;;  %vm1292_vm8 = vc.u32 %v3665_v6, %v3658_v2 }
 0x18e   : > { %v1294_v54 = vsel %vm1292_vm8, %v1293_v59, %v3659_v0  ;;  %v1557_v16 = vadd.s32 1, %v2431_v23  ;;  %vm1119_vm10 = vweird.f32 %v3413_v11  ;;  %vm1123_vm9 = vcmp.eq.s32.totalorder %v1121_v35, 0 }
 0x18f   : > { %v1414_v29 = vor.u32 %v1413_v34, %v1412_v1  ;;  %v1417_v48 = vshll.u32 %v1416_v21, 23  ;;  %v2632_v4 = vpop.eup %2631  ;;  %v1295_v40 = vadd.s32 %v1294_v54, %v1290_v63  ;;  %v1547_v31 = vand.u32 2147483647, %v3626_v47 }
 0x190   : > { %v2634_v37 = vpop.eup %2633  ;;  %vm1126_vm11 = vcmp.eq.s32.totalorder %v1121_v35, 2  ;;  %v1127_v38 = vxor.u32 2147483648, %v2632_v4  ;;  %vm1558_vm12 = vcmp.gt.s32.totalorder %v1557_v16, 0  ;;  %v1432_v17 = vadd.s32 3, %v1428_v39 }
 0x191   : > { %v1418_v27 = vor.u32 4788187, %v1417_v48  ;;  %v1124_v30 = vxor.u32 2147483648, %v2634_v37  ;;  %v1296_v10 = vadd.s32 536870912, %v1295_v40  ;;  %v1559_v3 = vsel %vm1558_vm12, %v1557_v16, 0 }
 0x192   : > { %v1128_v14 = vsel %vm1126_vm11, %v1127_v38, %v2634_v37  ;;  %v1421_v25 = vcvt.s32.f32 %v1414_v29  ;;  %v1561_v43 = vand.u32 31, %v1559_v3  ;;  %vm1122_vm13 = vcmp.lt.s32.totalorder %v1121_v35, 2 }
 0x193   : > { %v1419_v32 = vand.u32 2147483647, %v1418_v27  ;;  %v1125_v24 = vsel %vm1123_vm9, %v2632_v4, %v1124_v30  ;;  %v3690_v61 = vshrl.u32 %v1296_v10, 30  ;;  %v1554_v55 = vand.u32 8388607, %v1547_v31 }
 0x194   : > { %v1129_v0 = vsel %vm1122_vm13, %v1125_v24, %v1128_v14  ;;  %v1562_v22 = vsub.s32 32, %v1561_v43  ;;  %v3695_v7 = vadd.f32 %v558_v60, %v3613_v20  ;;  %v3701_v46 = vand.u32 3, %v1432_v17 }
 0x195   : > { %v1422_v36 = vmul.f32 %v1421_v25, %v1419_v32  ;;  %v1130_v53 = vsel %vm1119_vm10, nan, %v1129_v0  ;;  %v1298_v42 = vshll.u32 %v3690_v61, 30  ;;  %v1555_v21 = vor.u32 8388608, %v1554_v55 }
 0x196   : > { %2279 = vst [vmem:[%s3407_s8 + $0x20] sm:$0xff] %v1130_v53  ;;  %v1565_v35 = vshrl.u32 %v4383_v28, %v1562_v22  ;;  %v1568_v1 = vshrl.u32 %v4384_v26, %v1562_v22  ;;  %v1564_v59 = vshll.u32 %v2770_v49, %v1561_v43  ;;  %v1571_v20 = vshrl.u32 %v2773_v62, %v1562_v22 }
 0x197   : > { %v1423_v33 = vxor.u32 2147483648, %v1422_v36  ;;  %v3705_v34 = vsub.s32 %v1295_v40, %v1298_v42  ;;  %v1560_v23 = vshrl.u32 %v1559_v3, 5  ;;  %v1567_v39 = vshll.u32 %v4383_v28, %v1561_v43 }
 0x198   : > { %v1446_v63 = vand.u32 2139095040, %v3695_v7  ;;  %v1566_v54 = vor.u32 %v1565_v35, %v1564_v59  ;;  %v1570_v16 = vshll.u32 %v4384_v26, %v1561_v43  ;;  %v1573_v40 = vshll.u32 %v2773_v62, %v1561_v43 }
 0x199   : > { %v1424_v11 = vsel %vm1341_vm1, %v1423_v33, %v1422_v36  ;;  %v1301_v48 = vsub.s32 0, %v3705_v34  ;;  %v1569_v4 = vor.u32 %v1568_v1, %v1567_v39  ;;  %v1574_v37 = vshrl.u32 %v2774_v52, %v1562_v22 }
 0x19a   : > { %v1427_v29 = vsel %vm3671_vm7, %v3491_v50, %v1424_v11  ;;  %v1572_v27 = vor.u32 %v1571_v20, %v1570_v16  ;;  %v1577_v30 = vshrl.u32 %v4385_v15, %v1562_v22  ;;  %v1576_v51 = vshll.u32 %v2774_v52, %v1561_v43 }
 0x19b   : > { %2635 = vcosq.f32 %v1427_v29  ;;  %v2420_v38 = vmin.u32 %v1301_v48, %v3705_v34  ;;  %v1575_v17 = vor.u32 %v1574_v37, %v1573_v40  ;;  %v1595_v10 = vshll.u32 %v1555_v21, 8 }
 0x19c   : > { %2637 = vsinq.f32 %v1427_v29  ;;  %v1447_v3 = vshrl.u32 %v1446_v63, 23  ;;  %v1563_v14 = vshrl.u32 %v2770_v49, %v1562_v22  ;;  %vm1579_vm14 = vcmp.lt.s32.totalorder %v1560_v23, 1 }
 0x19d   : > { %v1303_v60 = vclz %v2420_v38  ;;  %vm1580_vm15 = vcmp.lt.s32.totalorder %v1560_v23, 2  ;;  %v1578_v32 = vor.u32 %v1577_v30, %v1576_v51  ;;  %vm1581_vm0 = vcmp.lt.s32.totalorder %v1560_v23, 3 }
 0x19e   : > { %vm1582_vm1 = vcmp.lt.s32.totalorder %v1560_v23, 4  ;;  %v1587_v25 = vsel %vm1579_vm14, %v1566_v54, %v1569_v4  ;;  %vm1237_vm2 = vcmp.lt.s32.totalorder %v3556_v58, 0  ;;  %v1591_v36 = vsel %vm1579_vm14, %v1569_v4, %v1572_v27 }
 0x19f   : > { %v2421_v24 = vadd.s32 4294967294, %v1303_v60  ;;  %v1584_v55 = vsel %vm1582_vm1, %v1572_v27, 2102212464  ;;  %v1588_v0 = vsel %vm1582_vm1, %v1575_v17, 920167782  ;;  %v1583_v53 = vsel %vm1579_vm14, %v1563_v14, %v1566_v54 }
 0x1a0   : > { %v1589_v42 = vsel %vm1581_vm0, %v1572_v27, %v1588_v0  ;;  %v1592_v43 = vsel %vm1582_vm1, %v1578_v32, 1326507024  ;;  %v2427_v33 = vadd.s32 4294967169, %v1447_v3  ;;  %v1585_v35 = vsel %vm1581_vm0, %v1569_v4, %v1584_v55 }
 0x1a1   : > { %vm2422_vm3 = vcmp.lt.s32.totalorder %v2421_v24, 0  ;;  %v1590_v22 = vsel %vm1580_vm15, %v1587_v25, %v1589_v42  ;;  %v1593_v1 = vsel %vm1581_vm0, %v1575_v17, %v1592_v43  ;;  %vm3728_vm4 = vcmp.le.f32.partialorder %v1235_v18, 0.7853982 }
 0x1a2   : > { %v1306_v59 = vsel %vm2422_vm3, 0, %v2421_v24  ;;  %v1594_v20 = vsel %vm1580_vm15, %v1591_v36, %v1593_v1  ;;  %v3733_v11 = vmul.u32.u64.low %v1595_v10, %v1590_v22  ;;  %v3734_v39 = vmul.u32.u64.high %v1595_v10, %v1590_v22, %v3733_v11 }
 0x1a3   : > { %vm1434_vm5 = vcmp.lt.s32.totalorder %v3701_v46, 2  ;;  %v1291_v63 = vadd.s32 %v3658_v2, %v3665_v6  ;;  %v1307_v29 = vsub.s32 32, %v1306_v59  ;;  %v1311_v48 = vsub.s32 4294967266, %v1306_v59 }
 0x1a4   : > { %vm1431_vm6 = vweird.f32 %v3491_v50  ;;  %v1321_v18 = vsub.s32 4, %v3690_v61  ;;  %v3742_v54 = vmul.u32.u64.low %v1595_v10, %v1594_v20  ;;  %v3743_v16 = vmul.u32.u64.high %v1595_v10, %v1594_v20, %v3742_v54 }
 0x1a5   : > { %v1453_v4 = vadd.s32 1, %v2427_v33  ;;  %v1308_v40 = vshll.u32 %v3705_v34, %v1306_v59  ;;  %v1309_v37 = vshrl.u32 %v1291_v63, %v1307_v29  ;;  %v1312_v38 = vadd.s32 127, %v1311_v48 }
 0x1a6   : > { %v1586_v27 = vsel %vm1580_vm15, %v1583_v53, %v1585_v35  ;;  %v1605_v30 = vadd.s32 1, %v3734_v39  ;;  %v1443_v2 = vand.u32 2147483647, %v3695_v7  ;;  %v3751_v6 = vadd.f32 %v3090_v41, %v3055_v5 }
 0x1a7   : > { %vm1454_vm7 = vcmp.gt.s32.totalorder %v1453_v4, 0  ;;  %vm1435_vm8 = vcmp.eq.s32.totalorder %v3701_v46, 0  ;;  %v1310_v51 = vor.u32 %v1309_v37, %v1308_v40  ;;  %v1313_v3 = vshll.u32 %v1312_v38, 23 }
 0x1a8   : > { %v2636_v17 = vpop.eup %2635  ;;  %v1455_v60 = vsel %vm1454_vm7, %v1453_v4, 0  ;;  %v1322_v23 = vsel %vm1237_vm2, %v1321_v18, %v3690_v61  ;;  %v1602_v32 = vmul.u32 %v1595_v10, %v1586_v27  ;;  %vm1604_vm10 = vc.u32 %v3743_v16, %v3733_v11  ;;  %v573_v27 = vpop.permute.xlu1 %572 }
 0x1a9   : > { %v2638_v34 = vpop.eup %2637  ;;  %v1439_v14 = vxor.u32 2147483648, %v2636_v17  ;;  %vm1438_vm9 = vcmp.eq.s32.totalorder %v3701_v46, 2  ;;  %v1314_v5 = vor.u32 4788187, %v1313_v3  ;;  %v1606_v41 = vsel %vm1604_vm10, %v1605_v30, %v3734_v39 }
 0x1aa   : > { %v1436_v25 = vxor.u32 2147483648, %v2638_v34  ;;  %v1607_v55 = vadd.s32 %v1606_v41, %v1602_v32  ;;  %v1450_v0 = vand.u32 8388607, %v1443_v2  ;;  %v1457_v36 = vand.u32 31, %v1455_v60 }
 0x1ab   : > { %v1440_v24 = vsel %vm1438_vm9, %v1439_v14, %v2638_v34  ;;  %v1315_v10 = vand.u32 2147483647, %v1314_v5  ;;  %v1317_v53 = vcvt.s32.f32 %v1310_v51  ;;  %v1324_v42 = vsel %vm3728_vm4, 0, %v1322_v23 }
 0x1ac   : > { %v1437_v61 = vsel %vm1435_vm8, %v2636_v17, %v1436_v25  ;;  %v1608_v33 = vadd.s32 536870912, %v1607_v55  ;;  %v3769_v35 = vshrl.u32 %v1455_v60, 5  ;;  %v1458_v22 = vsub.s32 32, %v1457_v36 }
 0x1ad   : > { %v1441_v43 = vsel %vm1434_vm5, %v1437_v61, %v1440_v24  ;;  %v1318_v59 = vmul.f32 %v1317_v53, %v1315_v10  ;;  %v1460_v20 = vshll.u32 %v2770_v49, %v1457_v36  ;;  %v1463_v39 = vshll.u32 %v4383_v28, %v1457_v36 }
 0x1ae   : > { %v1442_v1 = vsel %vm1431_vm6, nan, %v1441_v43  ;;  %v3776_v63 = vshrl.u32 %v1608_v33, 30  ;;  %v1461_v29 = vshrl.u32 %v4383_v28, %v1458_v22  ;;  %v1464_v46 = vshrl.u32 %v4384_v26, %v1458_v22 }
 0x1af   : > { %2282 = vst [vmem:[%s3407_s8 + $0x38] sm:$0xff] %v1442_v1  ;;  %v1466_v48 = vshll.u32 %v4384_v26, %v1457_v36  ;;  %v1319_v18 = vxor.u32 2147483648, %v1318_v59  ;;  %v1467_v54 = vshrl.u32 %v2773_v62, %v1458_v22  ;;  %v1469_v50 = vshll.u32 %v2773_v62, %v1457_v36 }
 0x1b0   : > { %v1470_v4 = vshrl.u32 %v2774_v52, %v1458_v22  ;;  %v1328_v40 = vadd.s32 3, %v1324_v42  ;;  %v1610_v37 = vshll.u32 %v3776_v63, 30  ;;  %v1462_v38 = vor.u32 %v1461_v29, %v1460_v20 }
 0x1b1   : > { %v1320_v30 = vsel %vm1237_vm2, %v1319_v18, %v1318_v59  ;;  %v1465_v17 = vor.u32 %v1464_v46, %v1463_v39  ;;  %v1468_v51 = vor.u32 %v1467_v54, %v1466_v48  ;;  %v1472_v14 = vshll.u32 %v2774_v52, %v1457_v36 }
 0x1b2   : > { %v1471_v3 = vor.u32 %v1470_v4, %v1469_v50  ;;  %v1323_v60 = vsel %vm3728_vm4, %v3556_v58, %v1320_v30  ;;  %v3790_v34 = vsub.s32 %v1607_v55, %v1610_v37  ;;  %v1473_v23 = vshrl.u32 %v4385_v15, %v1458_v22 }
 0x1b3   : > { %2639 = vcosq.f32 %v1323_v60  ;;  %v1451_v32 = vor.u32 8388608, %v1450_v0  ;;  %vm1475_vm11 = vcmp.lt.s32.totalorder %v3769_v35, 1  ;;  %v3796_v25 = vadd.f32 %v573_v27, %v3678_v19 }
 0x1b4   : > { %2641 = vsinq.f32 %v1323_v60  ;;  %v1613_v5 = vsub.s32 0, %v3790_v34  ;;  %v1474_v41 = vor.u32 %v1473_v23, %v1472_v14  ;;  %vm1478_vm12 = vcmp.lt.s32.totalorder %v3769_v35, 4 }
 0x1b5   : > { %vm1476_vm13 = vcmp.lt.s32.totalorder %v3769_v35, 2  ;;  %vm1477_vm14 = vcmp.lt.s32.totalorder %v3769_v35, 3  ;;  %v1483_v21 = vsel %vm1475_vm11, %v1462_v38, %v1465_v17  ;;  %v1484_v24 = vsel %vm1478_vm12, %v1471_v3, 920167782 }
 0x1b6   : > { %v2432_v55 = vmin.u32 %v1613_v5, %v3790_v34  ;;  %v1459_v0 = vshrl.u32 %v2770_v49, %v1458_v22  ;;  %v1480_v19 = vsel %vm1478_vm12, %v1468_v51, 2102212464  ;;  %v1485_v36 = vsel %vm1477_vm14, %v1468_v51, %v1484_v24 }
 0x1b7   : > { %v1486_v61 = vsel %vm1476_vm13, %v1483_v21, %v1485_v36  ;;  %v1487_v10 = vsel %vm1475_vm11, %v1465_v17, %v1468_v51  ;;  %v1488_v53 = vsel %vm1478_vm12, %v1474_v41, 1326507024  ;;  %v1491_v42 = vshll.u32 %v1451_v32, 8  ;;  %v568_v21 = vpop.permute.xlu0 %567 }
 0x1b8   : > { %v1329_v43 = vand.u32 3, %v1328_v40  ;;  %v1615_v33 = vclz %v2432_v55  ;;  %v1479_v1 = vsel %vm1475_vm11, %v1459_v0, %v1462_v38  ;;  %v1481_v59 = vsel %vm1477_vm14, %v1465_v17, %v1480_v19 }
 0x1b9   : > { %v1489_v20 = vsel %vm1477_vm14, %v1471_v3, %v1488_v53  ;;  %v3812_v39 = vmul.u32.u64.low %v1491_v42, %v1486_v61  ;;  %v3813_v29 = vmul.u32.u64.high %v1491_v42, %v1486_v61, %v3812_v39  ;;  %vm3818_vm15 = vcmp.le.f32.partialorder %v1547_v31, 0.7853982 }
 0x1ba   : > { %v2433_v46 = vadd.s32 4294967294, %v1615_v33  ;;  %v1633_v48 = vsub.s32 4, %v3776_v63  ;;  %v1490_v18 = vsel %vm1476_vm13, %v1487_v10, %v1489_v20  ;;  %v1758_v54 = vand.u32 2139095040, %v3796_v25 }
 0x1bb   : > { %vm1549_vm0 = vcmp.lt.s32.totalorder %v3626_v47, 0  ;;  %v3827_v50 = vmul.u32.u64.low %v1491_v42, %v1490_v18  ;;  %v3828_v4 = vmul.u32.u64.high %v1491_v42, %v1490_v18, %v3827_v50  ;;  %v1755_v40 = vand.u32 2147483647, %v3796_v25 }
 0x1bc   : > { %vm1330_vm1 = vcmp.lt.s32.totalorder %v1329_v43, 2  ;;  %vm2434_vm2 = vcmp.lt.s32.totalorder %v2433_v46, 0  ;;  %v1482_v31 = vsel %vm1476_vm13, %v1479_v1, %v1481_v59  ;;  %v1759_v37 = vshrl.u32 %v1758_v54, 23 }
 0x1bd   : > { %v3835_v38 = vadd.f32 %v3092_v44, %v3058_v8  ;;  %v1603_v27 = vadd.s32 %v3733_v11, %v3743_v16  ;;  %v1618_v30 = vsel %vm2434_vm2, 0, %v2433_v46  ;;  %v1501_v17 = vadd.s32 1, %v3813_v29 }
 0x1be   : > { %v3842_v51 = vadd.f32 %v3094_v45, %v3061_v9  ;;  %v1619_v3 = vsub.s32 32, %v1618_v30  ;;  %v1623_v60 = vsub.s32 4294967266, %v1618_v30  ;;  %v1634_v35 = vsel %vm1549_vm0, %v1633_v48, %v3776_v63 }
 0x1bf   : > { %v2439_v14 = vadd.s32 4294967169, %v1759_v37  ;;  %v1620_v8 = vshll.u32 %v3790_v34, %v1618_v30  ;;  %v1498_v44 = vmul.u32 %v1491_v42, %v1482_v31  ;;  %vm1500_vm3 = vc.u32 %v3828_v4, %v3812_v39 }
 0x1c0   : > { %v1762_v11 = vand.u32 8388607, %v1755_v40  ;;  %v2640_v16 = vpop.eup %2639  ;;  %v1621_v23 = vshrl.u32 %v1603_v27, %v1619_v3  ;;  %v1624_v9 = vadd.s32 127, %v1623_v60  ;;  %v1502_v45 = vsel %vm1500_vm3, %v1501_v17, %v3813_v29 }
 0x1c1   : > { %v1765_v32 = vadd.s32 1, %v2439_v14  ;;  %v2642_v5 = vpop.eup %2641  ;;  %vm1331_vm4 = vcmp.eq.s32.totalorder %v1329_v43, 0  ;;  %vm1334_vm5 = vcmp.eq.s32.totalorder %v1329_v43, 2  ;;  %v1335_v63 = vxor.u32 2147483648, %v2640_v16 }
 0x1c2   : > { %v1503_v41 = vadd.s32 %v1502_v45, %v1498_v44  ;;  %v1332_v34 = vxor.u32 2147483648, %v2642_v5  ;;  %v1622_v24 = vor.u32 %v1621_v23, %v1620_v8  ;;  %v1625_v55 = vshll.u32 %v1624_v9, 23 }
 0x1c3   : > { %vm1766_vm6 = vcmp.gt.s32.totalorder %v1765_v32, 0  ;;  %v1336_v0 = vsel %vm1334_vm5, %v1335_v63, %v2642_v5  ;;  %v1636_v19 = vsel %vm3818_vm15, 0, %v1634_v35  ;;  %v1763_v42 = vor.u32 8388608, %v1762_v11 }
 0x1c4   : > { %v1504_v36 = vadd.s32 536870912, %v1503_v41  ;;  %v1767_v61 = vsel %vm1766_vm6, %v1765_v32, 0  ;;  %v1333_v10 = vsel %vm1331_vm4, %v2640_v16, %v1332_v34  ;;  %v1626_v53 = vor.u32 4788187, %v1625_v55 }
 0x1c5   : > { %v3856_v33 = vadd.f32 %v568_v21, %v3751_v6  ;;  %vm1327_vm7 = vweird.f32 %v3556_v58  ;;  %v1337_v1 = vsel %vm1330_vm1, %v1333_v10, %v1336_v0  ;;  %v1769_v20 = vand.u32 31, %v1767_v61 }
 0x1c6   : > { %v3860_v59 = vshrl.u32 %v1504_v36, 30  ;;  %v1338_v29 = vsel %vm1327_vm7, nan, %v1337_v1  ;;  %v1627_v46 = vand.u32 2147483647, %v1626_v53  ;;  %v1629_v48 = vcvt.s32.f32 %v1622_v24 }
 0x1c7   : > { %2281 = vst [vmem:[%s3407_s8 + $0x30] sm:$0xff] %v1338_v29  ;;  %v3863_v18 = vadd.s32 3, %v1636_v19  ;;  %v1770_v50 = vsub.s32 32, %v1769_v20  ;;  %v1499_v6 = vadd.s32 %v3812_v39, %v3828_v4  ;;  %v3868_v37 = vshll.u32 %v1763_v42, 8 }
 0x1c8   : > { %v1506_v54 = vshll.u32 %v3860_v59, 30  ;;  %v1630_v31 = vmul.f32 %v1629_v48, %v1627_v46  ;;  %v1654_v58 = vand.u32 2139095040, %v3856_v33  ;;  %v1768_v27 = vshrl.u32 %v1767_v61, 5 }
 0x1c9   : > { %v1772_v30 = vshll.u32 %v2770_v49, %v1769_v20  ;;  %v1773_v17 = vshrl.u32 %v4383_v28, %v1770_v50  ;;  %v1776_v60 = vshrl.u32 %v4384_v26, %v1770_v50  ;;  %v1778_v35 = vshll.u32 %v4384_v26, %v1769_v20 }
 0x1ca   : > { %v3871_v43 = vsub.s32 %v1503_v41, %v1506_v54  ;;  %v1631_v3 = vxor.u32 2147483648, %v1630_v31  ;;  %v1779_v14 = vshrl.u32 %v2773_v62, %v1770_v50  ;;  %v1775_v4 = vshll.u32 %v4383_v28, %v1769_v20 }
 0x1cb   : > { %v1781_v8 = vshll.u32 %v2773_v62, %v1769_v20  ;;  %v1782_v44 = vshrl.u32 %v2774_v52, %v1770_v50  ;;  %vm1445_vm8 = vcmp.lt.s32.totalorder %v3695_v7, 0  ;;  %v1774_v16 = vor.u32 %v1773_v17, %v1772_v30 }
 0x1cc   : > { %v1509_v39 = vsub.s32 0, %v3871_v43  ;;  %v1632_v11 = vsel %vm1549_vm0, %v1631_v3, %v1630_v31  ;;  %v1780_v23 = vor.u32 %v1779_v14, %v1778_v35  ;;  %v1655_v9 = vshrl.u32 %v1654_v58, 23 }
 0x1cd   : > { %v1635_v45 = vsel %vm3818_vm15, %v3626_v47, %v1632_v11  ;;  %v1777_v5 = vor.u32 %v1776_v60, %v1775_v4  ;;  %v1783_v63 = vor.u32 %v1782_v44, %v1781_v8  ;;  %v1784_v41 = vshll.u32 %v2774_v52, %v1769_v20 }
 0x1ce   : > { %v2428_v32 = vmin.u32 %v1509_v39, %v3871_v43  ;;  %2643 = vcosq.f32 %v1635_v45  ;;  %v1785_v21 = vshrl.u32 %v4385_v15, %v1770_v50  ;;  %vm1787_vm10 = vcmp.lt.s32.totalorder %v1768_v27, 1 }
 0x1cf   : > { %2645 = vsinq.f32 %v1635_v45  ;;  %vm1788_vm9 = vcmp.lt.s32.totalorder %v1768_v27, 2  ;;  %vm1790_vm11 = vcmp.lt.s32.totalorder %v1768_v27, 4  ;;  %v1529_v24 = vsub.s32 4, %v3860_v59 }
 0x1d0   : > { %v1511_v34 = vclz %v2428_v32  ;;  %v1771_v55 = vshrl.u32 %v2770_v49, %v1770_v50  ;;  %v1786_v22 = vor.u32 %v1785_v21, %v1784_v41  ;;  %v1792_v0 = vsel %vm1790_vm11, %v1780_v23, 2102212464 }
 0x1d1   : > { %vm1789_vm12 = vcmp.lt.s32.totalorder %v1768_v27, 3  ;;  %v1795_v36 = vsel %vm1787_vm10, %v1774_v16, %v1777_v5  ;;  %v1796_v61 = vsel %vm1790_vm11, %v1783_v63, 920167782  ;;  %v1799_v42 = vsel %vm1787_vm10, %v1777_v5, %v1780_v23 }
 0x1d2   : > { %v2429_v19 = vadd.s32 4294967294, %v1511_v34  ;;  %v1791_v10 = vsel %vm1787_vm10, %v1771_v55, %v1774_v16  ;;  %v1797_v53 = vsel %vm1789_vm12, %v1780_v23, %v1796_v61  ;;  %v1800_v1 = vsel %vm1790_vm11, %v1786_v22, 1326507024 }
 0x1d3   : > { %v1793_v20 = vsel %vm1789_vm12, %v1777_v5, %v1792_v0  ;;  %v1798_v29 = vsel %vm1788_vm9, %v1795_v36, %v1797_v53  ;;  %v1801_v46 = vsel %vm1789_vm12, %v1783_v63, %v1800_v1  ;;  %v1530_v17 = vsel %vm1445_vm8, %v1529_v24, %v3860_v59 }
 0x1d4   : > { %vm2430_vm13 = vcmp.lt.s32.totalorder %v2429_v19, 0  ;;  %v1802_v54 = vsel %vm1788_vm9, %v1799_v42, %v1801_v46  ;;  %v3896_v50 = vmul.u32.u64.low %v3868_v37, %v1798_v29  ;;  %v3897_v31 = vmul.u32.u64.high %v3868_v37, %v1798_v29, %v3896_v50 }
 0x1d5   : > { %v1514_v48 = vsel %vm2430_vm13, 0, %v2429_v19  ;;  %v2435_v3 = vadd.s32 4294967169, %v1655_v9  ;;  %vm3905_vm14 = vcmp.le.f32.partialorder %v1443_v2, 0.7853982  ;;  %v1794_v35 = vsel %vm1788_vm9, %v1791_v10, %v1793_v20 }
 0x1d6   : > { %v1515_v58 = vsub.s32 32, %v1514_v48  ;;  %v1519_v30 = vsub.s32 4294967266, %v1514_v48  ;;  %v3911_v14 = vmul.u32.u64.low %v3868_v37, %v1802_v54  ;;  %v3912_v39 = vmul.u32.u64.high %v3868_v37, %v1802_v54, %v3911_v14 }
 0x1d7   : > { %v1516_v4 = vshll.u32 %v3871_v43, %v1514_v48  ;;  %v1661_v11 = vadd.s32 1, %v2435_v3  ;;  %v1641_v59 = vand.u32 3, %v3863_v18  ;;  %v1532_v16 = vsel %vm3905_vm14, 0, %v1530_v17 }
 0x1d8   : > { %v1517_v8 = vshrl.u32 %v1499_v6, %v1515_v58  ;;  %v1520_v44 = vadd.s32 127, %v1519_v30  ;;  %v1813_v2 = vadd.s32 1, %v3897_v31  ;;  %v3921_v27 = vadd.f32 %v3100_v56, %v3064_v12 }
 0x1d9   : > { %vm1662_vm15 = vcmp.gt.s32.totalorder %v1661_v11, 0  ;;  %vm1639_vm0 = vweird.f32 %v3626_v47  ;;  %v1810_v6 = vmul.u32 %v3868_v37, %v1794_v35  ;;  %vm1812_vm1 = vc.u32 %v3912_v39, %v3896_v50 }
 0x1da   : > { %v1518_v23 = vor.u32 %v1517_v8, %v1516_v4  ;;  %v1521_v9 = vshll.u32 %v1520_v44, 23  ;;  %v1663_v18 = vsel %vm1662_vm15, %v1661_v11, 0  ;;  %v1536_v32 = vadd.s32 3, %v1532_v16  ;;  %v583_v4 = vpop.permute.xlu1 %582 }
 0x1db   : > { %v2644_v43 = vpop.eup %2643  ;;  %v1814_v5 = vsel %vm1812_vm1, %v1813_v2, %v3897_v31  ;;  %v1651_v63 = vand.u32 2147483647, %v3856_v33  ;;  %vm1642_vm2 = vcmp.lt.s32.totalorder %v1641_v59, 2  ;;  %v1665_v21 = vand.u32 31, %v1663_v18 }
 0x1dc   : > { %v1522_v45 = vor.u32 4788187, %v1521_v9  ;;  %v2646_v12 = vpop.eup %2645  ;;  %v1647_v56 = vxor.u32 2147483648, %v2644_v43  ;;  %v1815_v41 = vadd.s32 %v1814_v5, %v1810_v6  ;;  %vm1646_vm3 = vcmp.eq.s32.totalorder %v1641_v59, 2 }
 0x1dd   : > { %v1644_v34 = vxor.u32 2147483648, %v2646_v12  ;;  %v1525_v37 = vcvt.s32.f32 %v1518_v23  ;;  %vm1643_vm4 = vcmp.eq.s32.totalorder %v1641_v59, 0  ;;  %v1666_v0 = vsub.s32 32, %v1665_v21 }
 0x1de   : > { %v1523_v24 = vand.u32 2147483647, %v1522_v45  ;;  %v1648_v55 = vsel %vm1646_vm3, %v1647_v56, %v2646_v12  ;;  %v1816_v22 = vadd.s32 536870912, %v1815_v41  ;;  %v3929_v61 = vand.u32 3, %v1536_v32 }
 0x1df   : > { %v1645_v19 = vsel %vm1643_vm4, %v2644_v43, %v1644_v34  ;;  %v1658_v10 = vand.u32 8388607, %v1651_v63  ;;  %v1668_v1 = vshll.u32 %v2770_v49, %v1665_v21  ;;  %v1669_v20 = vshrl.u32 %v4383_v28, %v1666_v0 }
 0x1e0   : > { %v1526_v36 = vmul.f32 %v1525_v37, %v1523_v24  ;;  %v1649_v53 = vsel %vm1642_vm2, %v1645_v19, %v1648_v55  ;;  %v1817_v42 = vshrl.u32 %v1816_v22, 30  ;;  %v1672_v48 = vshrl.u32 %v4384_v26, %v1666_v0 }
 0x1e1   : > { %v1650_v29 = vsel %vm1639_vm0, nan, %v1649_v53  ;;  %v1675_v54 = vshrl.u32 %v2773_v62, %v1666_v0  ;;  %v1664_v58 = vshrl.u32 %v1663_v18, 5  ;;  %v1671_v30 = vshll.u32 %v4383_v28, %v1665_v21 }
 0x1e2   : > { %v1527_v46 = vxor.u32 2147483648, %v1526_v36  ;;  %2284 = vst [vmem:[%s3407_s8 + $0x48] sm:$0xff] %v1650_v29  ;;  %v1818_v31 = vshll.u32 %v1817_v42, 30  ;;  %v1674_v17 = vshll.u32 %v4384_v26, %v1665_v21  ;;  %v1670_v35 = vor.u32 %v1669_v20, %v1668_v1  ;;  %v578_v1 = vpop.permute.xlu0 %577 }
 0x1e3   : > { %v1677_v14 = vshll.u32 %v2773_v62, %v1665_v21  ;;  %v1678_v47 = vshrl.u32 %v2774_v52, %v1666_v0  ;;  %v1673_v11 = vor.u32 %v1672_v48, %v1671_v30  ;;  %v1680_v2 = vshll.u32 %v2774_v52, %v1665_v21 }
 0x1e4   : > { %v1528_v3 = vsel %vm1445_vm8, %v1527_v46, %v1526_v36  ;;  %v3950_v44 = vsub.s32 %v1815_v41, %v1818_v31  ;;  %v1676_v59 = vor.u32 %v1675_v54, %v1674_v17  ;;  %v1681_v23 = vshrl.u32 %v4385_v15, %v1666_v0 }
 0x1e5   : > { %v1531_v8 = vsel %vm3905_vm14, %v3695_v7, %v1528_v3  ;;  %v1679_v16 = vor.u32 %v1678_v47, %v1677_v14  ;;  %v1659_v6 = vor.u32 8388608, %v1658_v10  ;;  %v3956_v18 = vadd.f32 %v583_v4, %v3835_v38 }
 0x1e6   : > { %2647 = vcosq.f32 %v1531_v8  ;;  %v1821_v9 = vsub.s32 0, %v3950_v44  ;;  %v1682_v43 = vor.u32 %v1681_v23, %v1680_v2  ;;  %vm1683_vm5 = vcmp.lt.s32.totalorder %v1664_v58, 1 }
 0x1e7   : > { %2649 = vsinq.f32 %v1531_v8  ;;  %vm1685_vm6 = vcmp.lt.s32.totalorder %v1664_v58, 3  ;;  %vm1686_vm7 = vcmp.lt.s32.totalorder %v1664_v58, 4  ;;  %vm3960_vm8 = vcmp.le.f32.partialorder %v1755_v40, 0.7853982 }
 0x1e8   : > { %v2440_v45 = vmin.u32 %v1821_v9, %v3950_v44  ;;  %v1688_v32 = vsel %vm1686_vm7, %v1676_v59, 2102212464  ;;  %v1691_v5 = vsel %vm1683_vm5, %v1670_v35, %v1673_v11  ;;  %v1692_v12 = vsel %vm1686_vm7, %v1679_v16, 920167782 }
 0x1e9   : > { %v1667_v56 = vshrl.u32 %v2770_v49, %v1666_v0  ;;  %v1693_v38 = vsel %vm1685_vm6, %v1676_v59, %v1692_v12  ;;  %v1695_v41 = vsel %vm1683_vm5, %v1673_v11, %v1676_v59  ;;  %v1696_v21 = vsel %vm1686_vm7, %v1682_v43, 1326507024 }
 0x1ea   : > { %v1823_v34 = vclz %v2440_v45  ;;  %v1841_v24 = vsub.s32 4, %v1817_v42  ;;  %vm1684_vm10 = vcmp.lt.s32.totalorder %v1664_v58, 2  ;;  %v1699_v40 = vshll.u32 %v1659_v6, 8 }
 0x1eb   : > { %v1687_v37 = vsel %vm1683_vm5, %v1667_v56, %v1670_v35  ;;  %v1689_v55 = vsel %vm1685_vm6, %v1673_v11, %v1688_v32  ;;  %v1694_v22 = vsel %vm1684_vm10, %v1691_v5, %v1693_v38  ;;  %v1697_v19 = vsel %vm1685_vm6, %v1679_v16, %v1696_v21 }
 0x1ec   : > { %v2441_v36 = vadd.s32 4294967294, %v1823_v34  ;;  %v1698_v0 = vsel %vm1684_vm10, %v1695_v41, %v1697_v19  ;;  %v3974_v10 = vmul.u32.u64.low %v1699_v40, %v1694_v22  ;;  %v3975_v53 = vmul.u32.u64.high %v1699_v40, %v1694_v22, %v3974_v10 }
 0x1ed   : > { %vm1757_vm9 = vcmp.lt.s32.totalorder %v3796_v25, 0  ;;  %v3978_v20 = vmul.u32.u64.low %v1699_v40, %v1698_v0  ;;  %v3979_v29 = vmul.u32.u64.high %v1699_v40, %v1698_v0, %v3978_v20  ;;  %v1966_v46 = vand.u32 2139095040, %v3956_v18 }
 0x1ee   : > { %vm1538_vm11 = vcmp.lt.s32.totalorder %v3929_v61, 2  ;;  %vm1539_vm12 = vcmp.eq.s32.totalorder %v3929_v61, 0  ;;  %vm2442_vm13 = vcmp.lt.s32.totalorder %v2441_v36, 0  ;;  %v1842_v48 = vsel %vm1757_vm9, %v1841_v24, %v1817_v42 }
 0x1ef   : > { %v1690_v54 = vsel %vm1684_vm10, %v1687_v37, %v1689_v55  ;;  %vm1535_vm14 = vweird.f32 %v3695_v7  ;;  %v1826_v31 = vsel %vm2442_vm13, 0, %v2441_v36  ;;  %v1963_v30 = vand.u32 2147483647, %v3956_v18 }
 0x1f0   : > { %v1967_v17 = vshrl.u32 %v1966_v46, 23  ;;  %v3990_v3 = vadd.f32 %v578_v1, %v3842_v51  ;;  %v1811_v35 = vadd.s32 %v3896_v50, %v3912_v39  ;;  %v1827_v14 = vsub.s32 32, %v1826_v31 }
 0x1f1   : > { %v1831_v47 = vsub.s32 4294967266, %v1826_v31  ;;  %v1709_v4 = vadd.s32 1, %v3975_v53  ;;  %v1844_v42 = vsel %vm3960_vm8, 0, %v1842_v48  ;;  %v1706_v58 = vmul.u32 %v1699_v40, %v1690_v54 }
 0x1f2   : > { %vm1708_vm15 = vc.u32 %v3979_v29, %v3974_v10  ;;  %v2447_v8 = vadd.s32 4294967169, %v1967_v17  ;;  %v1828_v59 = vshll.u32 %v3950_v44, %v1826_v31  ;;  %v1829_v16 = vshrl.u32 %v1811_v35, %v1827_v14 }
 0x1f3   : > { %v2648_v11 = vpop.eup %2647  ;;  %v1832_v51 = vadd.s32 127, %v1831_v47  ;;  %v1710_v2 = vsel %vm1708_vm15, %v1709_v4, %v3975_v53  ;;  %v1970_v9 = vand.u32 8388607, %v1963_v30  ;;  %vm1542_vm0 = vcmp.eq.s32.totalorder %v3929_v61, 2 }
 0x1f4   : > { %v2650_v23 = vpop.eup %2649  ;;  %v1543_v50 = vxor.u32 2147483648, %v2648_v11  ;;  %v1711_v39 = vadd.s32 %v1710_v2, %v1706_v58  ;;  %v1973_v6 = vadd.s32 1, %v2447_v8  ;;  %v1830_v45 = vor.u32 %v1829_v16, %v1828_v59 }
 0x1f5   : > { %v1540_v43 = vxor.u32 2147483648, %v2650_v23  ;;  %v1833_v32 = vshll.u32 %v1832_v51, 23  ;;  %v1848_v12 = vadd.s32 3, %v1844_v42  ;;  %v1862_v21 = vand.u32 2139095040, %v3990_v3 }
 0x1f6   : > { %v1544_v5 = vsel %vm1542_vm0, %v1543_v50, %v2650_v23  ;;  %v1712_v44 = vadd.s32 536870912, %v1711_v39  ;;  %vm1974_vm1 = vcmp.gt.s32.totalorder %v1973_v6, 0  ;;  %v1971_v40 = vor.u32 8388608, %v1970_v9 }
 0x1f7   : > { %v1541_v56 = vsel %vm1539_vm12, %v2648_v11, %v1540_v43  ;;  %v1834_v38 = vor.u32 4788187, %v1833_v32  ;;  %v1975_v41 = vsel %vm1974_vm1, %v1973_v6, 0  ;;  %v1837_v19 = vcvt.s32.f32 %v1830_v45 }
 0x1f8   : > { %v1545_v34 = vsel %vm1538_vm11, %v1541_v56, %v1544_v5  ;;  %v4008_v24 = vshrl.u32 %v1712_v44, 30  ;;  %v1977_v37 = vand.u32 31, %v1975_v41  ;;  %v4014_v1 = vand.u32 3, %v1848_v12 }
 0x1f9   : > { %v1546_v55 = vsel %vm1535_vm14, nan, %v1545_v34  ;;  %v1835_v22 = vand.u32 2147483647, %v1834_v38  ;;  %v1707_v20 = vadd.s32 %v3974_v10, %v3979_v29  ;;  %v1859_v61 = vand.u32 2147483647, %v3990_v3 }
 0x1fa   : > { %2283 = vst [vmem:[%s3407_s8 + $0x40] sm:$0xff] %v1546_v55  ;;  %v1714_v36 = vshll.u32 %v4008_v24, 30  ;;  %v1978_v0 = vsub.s32 32, %v1977_v37  ;;  %v4021_v54 = vshll.u32 %v1971_v40, 8  ;;  %v1863_v7 = vshrl.u32 %v1862_v21, 23 }
 0x1fb   : > { %v1838_v53 = vmul.f32 %v1837_v19, %v1835_v22  ;;  %v1980_v17 = vshll.u32 %v2770_v49, %v1977_v37  ;;  %v1983_v10 = vshll.u32 %v4383_v28, %v1977_v37  ;;  %v1986_v29 = vshll.u32 %v4384_v26, %v1977_v37 }
 0x1fc   : > { %v4018_v46 = vsub.s32 %v1711_v39, %v1714_v36  ;;  %v1981_v48 = vshrl.u32 %v4383_v28, %v1978_v0  ;;  %v1984_v35 = vshrl.u32 %v4384_v26, %v1978_v0  ;;  %v1987_v14 = vshrl.u32 %v2773_v62, %v1978_v0 }
 0x1fd   : > { %v1839_v31 = vxor.u32 2147483648, %v1838_v53  ;;  %v1990_v4 = vshrl.u32 %v2774_v52, %v1978_v0  ;;  %v1976_v58 = vshrl.u32 %v1975_v41, 5  ;;  %v1989_v11 = vshll.u32 %v2773_v62, %v1977_v37 }
 0x1fe   : > { %v1717_v47 = vsub.s32 0, %v4018_v46  ;;  %v1982_v8 = vor.u32 %v1981_v48, %v1980_v17  ;;  %v1985_v51 = vor.u32 %v1984_v35, %v1983_v10  ;;  %v1988_v2 = vor.u32 %v1987_v14, %v1986_v29 }
 0x1ff   : > { %v1840_v42 = vsel %vm1757_vm9, %v1839_v31, %v1838_v53  ;;  %v1991_v23 = vor.u32 %v1990_v4, %v1989_v11  ;;  %v1992_v50 = vshll.u32 %v2774_v52, %v1977_v37  ;;  %v1993_v39 = vshrl.u32 %v4385_v15, %v1978_v0 }
 0x200   : > { %v1843_v59 = vsel %vm3960_vm8, %v3796_v25, %v1840_v42  ;;  %v2436_v16 = vmin.u32 %v1717_v47, %v4018_v46  ;;  %v2443_v6 = vadd.s32 4294967169, %v1863_v7  ;;  %v4041_v43 = vand.u32 8388607, %v1859_v61 }
 0x201   : > { %2651 = vcosq.f32 %v1843_v59  ;;  %vm1653_vm2 = vcmp.lt.s32.totalorder %v3856_v33, 0  ;;  %v1737_v60 = vsub.s32 4, %v4008_v24  ;;  %v1979_v45 = vshrl.u32 %v2770_v49, %v1978_v0 }
 0x202   : > { %2653 = vsinq.f32 %v1843_v59  ;;  %v1719_v9 = vclz %v2436_v16  ;;  %v1994_v32 = vor.u32 %v1993_v39, %v1992_v50  ;;  %vm1995_vm3 = vcmp.lt.s32.totalorder %v1976_v58, 1 }
 0x203   : > { %vm1997_vm4 = vcmp.lt.s32.totalorder %v1976_v58, 3  ;;  %vm1998_vm5 = vcmp.lt.s32.totalorder %v1976_v58, 4  ;;  %v2003_v12 = vsel %vm1995_vm3, %v1982_v8, %v1985_v51  ;;  %v2007_v38 = vsel %vm1995_vm3, %v1985_v51, %v1988_v2 }
 0x204   : > { %v2437_v5 = vadd.s32 4294967294, %v1719_v9  ;;  %v2000_v44 = vsel %vm1998_vm5, %v1988_v2, 2102212464  ;;  %v2004_v56 = vsel %vm1998_vm5, %v1991_v23, 920167782  ;;  %vm1996_vm8 = vcmp.lt.s32.totalorder %v1976_v58, 2 }
 0x205   : > { %v2008_v41 = vsel %vm1998_vm5, %v1994_v32, 1326507024  ;;  %vm4048_vm6 = vcmp.le.f32.partialorder %v1651_v63, 0.7853982  ;;  %v2005_v34 = vsel %vm1997_vm4, %v1988_v2, %v2004_v56  ;;  %v1999_v55 = vsel %vm1995_vm3, %v1979_v45, %v1982_v8 }
 0x206   : > { %vm2438_vm7 = vcmp.lt.s32.totalorder %v2437_v5, 0  ;;  %v2009_v40 = vsel %vm1997_vm4, %v1991_v23, %v2008_v41  ;;  %v2006_v22 = vsel %vm1996_vm8, %v2003_v12, %v2005_v34  ;;  %v2001_v53 = vsel %vm1997_vm4, %v1985_v51, %v2000_v44 }
 0x207   : > { %v1722_v37 = vsel %vm2438_vm7, 0, %v2437_v5  ;;  %v2010_v19 = vsel %vm1996_vm8, %v2007_v38, %v2009_v40  ;;  %v1869_v63 = vadd.s32 1, %v2443_v6  ;;  %vm1847_vm9 = vweird.f32 %v3796_v25 }
 0x208   : > { %v1723_v36 = vsub.s32 32, %v1722_v37  ;;  %v1727_v0 = vsub.s32 4294967266, %v1722_v37  ;;  %v4058_v48 = vmul.u32.u64.low %v4021_v54, %v2010_v19  ;;  %v4059_v7 = vmul.u32.u64.high %v4021_v54, %v2010_v19, %v4058_v48 }
 0x209   : > { %v4062_v31 = vmul.u32.u64.low %v4021_v54, %v2006_v22  ;;  %v4063_v17 = vmul.u32.u64.high %v4021_v54, %v2006_v22, %v4062_v31  ;;  %v1724_v35 = vshll.u32 %v4018_v46, %v1722_v37  ;;  %vm1870_vm10 = vcmp.gt.s32.totalorder %v1869_v63, 0 }
 0x20a   : > { %v1725_v14 = vshrl.u32 %v1707_v20, %v1723_v36  ;;  %v1728_v47 = vadd.s32 127, %v1727_v0  ;;  %vm1850_vm11 = vcmp.lt.s32.totalorder %v4014_v1, 2  ;;  %v2002_v10 = vsel %vm1996_vm8, %v1999_v55, %v2001_v53 }
 0x20b   : > { %v1871_v29 = vsel %vm1870_vm10, %v1869_v63, 0  ;;  %v4072_v4 = vadd.f32 %v3102_v57, %v3067_v13  ;;  %v1738_v46 = vsel %vm1653_vm2, %v1737_v60, %v4008_v24  ;;  %vm1851_vm12 = vcmp.eq.s32.totalorder %v4014_v1, 0  ;;  %v593_v63 = vpop.permute.xlu1 %592 }
 0x20c   : > { %v1726_v42 = vor.u32 %v1725_v14, %v1724_v35  ;;  %v1729_v8 = vshll.u32 %v1728_v47, 23  ;;  %v1873_v20 = vand.u32 31, %v1871_v29  ;;  %vm1854_vm13 = vcmp.eq.s32.totalorder %v4014_v1, 2 }
 0x20d   : > { %vm2020_vm14 = vc.u32 %v4059_v7, %v4062_v31  ;;  %v2021_v58 = vadd.s32 1, %v4063_v17  ;;  %v2018_v13 = vmul.u32 %v4021_v54, %v2002_v10  ;;  %v1867_v57 = vor.u32 8388608, %v4041_v43 }
 0x20e   : > { %v2652_v11 = vpop.eup %2651  ;;  %v1730_v59 = vor.u32 4788187, %v1729_v8  ;;  %v1874_v16 = vsub.s32 32, %v1873_v20  ;;  %v1740_v24 = vsel %vm4048_vm6, 0, %v1738_v46  ;;  %v4087_v50 = vshrl.u32 %v1871_v29, 5 }
 0x20f   : > { %v2654_v51 = vpop.eup %2653  ;;  %v1855_v2 = vxor.u32 2147483648, %v2652_v11  ;;  %v2022_v23 = vsel %vm2020_vm14, %v2021_v58, %v4063_v17  ;;  %v1733_v6 = vcvt.s32.f32 %v1726_v42  ;;  %v1876_v54 = vshll.u32 %v2770_v49, %v1873_v20 }
 0x210   : > { %v1852_v39 = vxor.u32 2147483648, %v2654_v51  ;;  %v1731_v9 = vand.u32 2147483647, %v1730_v59  ;;  %v2023_v60 = vadd.s32 %v2022_v23, %v2018_v13  ;;  %v1877_v43 = vshrl.u32 %v4383_v28, %v1874_v16 }
 0x211   : > { %v1856_v45 = vsel %vm1854_vm13, %v1855_v2, %v2654_v51  ;;  %v1880_v32 = vshrl.u32 %v4384_v26, %v1874_v16  ;;  %v1883_v56 = vshrl.u32 %v2773_v62, %v1874_v16  ;;  %v1879_v41 = vshll.u32 %v4383_v28, %v1873_v20 }
 0x212   : > { %v1853_v5 = vsel %vm1851_vm12, %v2652_v11, %v1852_v39  ;;  %v1734_v12 = vmul.f32 %v1733_v6, %v1731_v9  ;;  %v2024_v44 = vadd.s32 536870912, %v2023_v60  ;;  %v1882_v34 = vshll.u32 %v4384_v26, %v1873_v20 }
 0x213   : > { %v1857_v38 = vsel %vm1850_vm11, %v1853_v5, %v1856_v45  ;;  %v1885_v40 = vshll.u32 %v2773_v62, %v1873_v20  ;;  %v1886_v19 = vshrl.u32 %v2774_v52, %v1874_v16  ;;  %v1878_v36 = vor.u32 %v1877_v43, %v1876_v54 }
 0x214   : > { %v1858_v37 = vsel %vm1847_vm9, nan, %v1857_v38  ;;  %v1735_v55 = vxor.u32 2147483648, %v1734_v12  ;;  %v2025_v22 = vshrl.u32 %v2024_v44, 30  ;;  %v1881_v0 = vor.u32 %v1880_v32, %v1879_v41 }
 0x215   : > { %2286 = vst [vmem:[%s3407_s8 + $0x58] sm:$0xff] %v1858_v37  ;;  %v1888_v53 = vshll.u32 %v2774_v52, %v1873_v20  ;;  %v1889_v1 = vshrl.u32 %v4385_v15, %v1874_v16  ;;  %v1884_v35 = vor.u32 %v1883_v56, %v1882_v34  ;;  %v1887_v14 = vor.u32 %v1886_v19, %v1885_v40 }
 0x216   : > { %v1736_v48 = vsel %vm1653_vm2, %v1735_v55, %v1734_v12  ;;  %v2026_v17 = vshll.u32 %v2025_v22, 30  ;;  %v1744_v47 = vadd.s32 3, %v1740_v24  ;;  %v1907_v29 = vshll.u32 %v1867_v57, 8 }
 0x217   : > { %v1739_v25 = vsel %vm4048_vm6, %v3856_v33, %v1736_v48  ;;  %v1890_v10 = vor.u32 %v1889_v1, %v1888_v53  ;;  %vm1891_vm15 = vcmp.lt.s32.totalorder %v4087_v50, 1  ;;  %v4117_v8 = vadd.f32 %v593_v63, %v3921_v27 }
 0x218   : > { %2655 = vcosq.f32 %v1739_v25  ;;  %v4113_v42 = vsub.s32 %v2023_v60, %v2026_v17  ;;  %v1875_v46 = vshrl.u32 %v2770_v49, %v1874_v16  ;;  %vm1894_vm0 = vcmp.lt.s32.totalorder %v4087_v50, 4 }
 0x219   : > { %2657 = vsinq.f32 %v1739_v25  ;;  %v1899_v20 = vsel %vm1891_vm15, %v1878_v36, %v1881_v0  ;;  %vm1893_vm1 = vcmp.lt.s32.totalorder %v4087_v50, 3  ;;  %v1896_v58 = vsel %vm1894_vm0, %v1884_v35, 2102212464 }
 0x21a   : > { %v2029_v21 = vsub.s32 0, %v4113_v42  ;;  %v1900_v11 = vsel %vm1894_vm0, %v1887_v14, 920167782  ;;  %vm1892_vm2 = vcmp.lt.s32.totalorder %v4087_v50, 2  ;;  %v1903_v13 = vsel %vm1891_vm15, %v1881_v0, %v1884_v35 }
 0x21b   : > { %v1901_v59 = vsel %vm1893_vm1, %v1884_v35, %v1900_v11  ;;  %v1904_v57 = vsel %vm1894_vm0, %v1890_v10, 1326507024  ;;  %v1895_v51 = vsel %vm1891_vm15, %v1875_v46, %v1878_v36  ;;  %v1897_v24 = vsel %vm1893_vm1, %v1881_v0, %v1896_v58  ;;  %v588_v36 = vpop.permute.xlu0 %587 }
 0x21c   : > { %v2448_v27 = vmin.u32 %v2029_v21, %v4113_v42  ;;  %v1902_v16 = vsel %vm1892_vm2, %v1899_v20, %v1901_v59  ;;  %v1905_v2 = vsel %vm1893_vm1, %v1887_v14, %v1904_v57  ;;  %v1745_v6 = vand.u32 3, %v1744_v47 }
 0x21d   : > { %v1906_v23 = vsel %vm1892_vm2, %v1903_v13, %v1905_v2  ;;  %v4129_v39 = vmul.u32.u64.low %v1907_v29, %v1902_v16  ;;  %v4130_v9 = vmul.u32.u64.high %v1907_v29, %v1902_v16, %v4129_v39  ;;  %v2049_v45 = vsub.s32 4, %v2025_v22 }
 0x21e   : > { %v2031_v60 = vclz %v2448_v27  ;;  %v4132_v54 = vmul.u32.u64.low %v1907_v29, %v1906_v23  ;;  %v4133_v43 = vmul.u32.u64.high %v1907_v29, %v1906_v23, %v4132_v54  ;;  %v1898_v5 = vsel %vm1892_vm2, %v1895_v51, %v1897_v24 }
 0x21f   : > { %v2174_v12 = vand.u32 2139095040, %v4117_v8  ;;  %vm4140_vm3 = vcmp.le.f32.partialorder %v1963_v30, 0.7853982  ;;  %vm1965_vm4 = vcmp.lt.s32.totalorder %v3956_v18, 0  ;;  %v1917_v56 = vadd.s32 1, %v4130_v9 }
 0x220   : > { %v2449_v32 = vadd.s32 4294967294, %v2031_v60  ;;  %v2171_v38 = vand.u32 2147483647, %v4117_v8  ;;  %vm1743_vm5 = vweird.f32 %v3856_v33  ;;  %vm1746_vm6 = vcmp.lt.s32.totalorder %v1745_v6, 2 }
 0x221   : > { %v2050_v50 = vsel %vm1965_vm4, %v2049_v45, %v2025_v22  ;;  %v2175_v41 = vshrl.u32 %v2174_v12, 23  ;;  %vm1750_vm8 = vcmp.eq.s32.totalorder %v1745_v6, 2  ;;  %v1914_v30 = vmul.u32 %v1907_v29, %v1898_v5 }
 0x222   : > { %vm2450_vm7 = vcmp.lt.s32.totalorder %v2449_v32, 0  ;;  %vm1916_vm10 = vc.u32 %v4133_v43, %v4129_v39  ;;  %v2019_v40 = vadd.s32 %v4062_v31, %v4059_v7  ;;  %v2052_v53 = vsel %vm4140_vm3, 0, %v2050_v50 }
 0x223   : > { %v2034_v34 = vsel %vm2450_vm7, 0, %v2449_v32  ;;  %v1918_v19 = vsel %vm1916_vm10, %v1917_v56, %v4130_v9  ;;  %v2455_v22 = vadd.s32 4294967169, %v2175_v41  ;;  %v2178_v63 = vand.u32 8388607, %v2171_v38 }
 0x224   : > { %v2035_v37 = vsub.s32 32, %v2034_v34  ;;  %v2039_v55 = vsub.s32 4294967266, %v2034_v34  ;;  %v1919_v1 = vadd.s32 %v1918_v19, %v1914_v30  ;;  %v2036_v35 = vshll.u32 %v4113_v42, %v2034_v34 }
 0x225   : > { %v2656_v0 = vpop.eup %2655  ;;  %v2181_v47 = vadd.s32 1, %v2455_v22  ;;  %v4160_v10 = vadd.f32 %v588_v36, %v4072_v4  ;;  %vm1747_vm9 = vcmp.eq.s32.totalorder %v1745_v6, 0  ;;  %v2056_v58 = vadd.s32 3, %v2052_v53 }
 0x226   : > { %v2658_v48 = vpop.eup %2657  ;;  %v1751_v17 = vxor.u32 2147483648, %v2656_v0  ;;  %v2037_v14 = vshrl.u32 %v2019_v40, %v2035_v37  ;;  %v2040_v7 = vadd.s32 127, %v2039_v55  ;;  %v1920_v25 = vadd.s32 536870912, %v1919_v1 }
 0x227   : > { %v1748_v31 = vxor.u32 2147483648, %v2658_v48  ;;  %vm2182_vm11 = vcmp.gt.s32.totalorder %v2181_v47, 0  ;;  %v2179_v13 = vor.u32 8388608, %v2178_v63  ;;  %v2070_v51 = vand.u32 2139095040, %v4160_v10 }
 0x228   : > { %v1752_v29 = vsel %vm1750_vm8, %v1751_v17, %v2658_v48  ;;  %v2038_v46 = vor.u32 %v2037_v14, %v2036_v35  ;;  %v2041_v20 = vshll.u32 %v2040_v7, 23  ;;  %v4163_v11 = vshrl.u32 %v1920_v25, 30 }
 0x229   : > { %v1749_v21 = vsel %vm1747_vm9, %v2656_v0, %v1748_v31  ;;  %v2183_v57 = vsel %vm2182_vm11, %v2181_v47, 0  ;;  %v4171_v23 = vand.u32 3, %v2056_v58  ;;  %v1915_v9 = vadd.s32 %v4129_v39, %v4133_v43 }
 0x22a   : > { %v1753_v42 = vsel %vm1746_vm6, %v1749_v21, %v1752_v29  ;;  %v2042_v59 = vor.u32 4788187, %v2041_v20  ;;  %v1922_v27 = vshll.u32 %v4163_v11, 30  ;;  %v2045_v2 = vcvt.s32.f32 %v2038_v46 }
 0x22b   : > { %v1754_v4 = vsel %vm1743_vm5, nan, %v1753_v42  ;;  %v2185_v24 = vand.u32 31, %v2183_v57  ;;  %v4174_v54 = vshll.u32 %v2179_v13, 8  ;;  %v2067_v33 = vand.u32 2147483647, %v4160_v10 }
 0x22c   : > { %2285 = vst [vmem:[%s3407_s8 + $0x50] sm:$0xff] %v1754_v4  ;;  %v2043_v16 = vand.u32 2147483647, %v2042_v59  ;;  %v1923_v6 = vsub.s32 %v1919_v1, %v1922_v27  ;;  %v2184_v5 = vshrl.u32 %v2183_v57, 5  ;;  %v2071_v56 = vshrl.u32 %v2070_v51, 23 }
 0x22d   : > { %v2186_v45 = vsub.s32 32, %v2185_v24  ;;  %v2188_v12 = vshll.u32 %v2770_v49, %v2185_v24  ;;  %v2191_v34 = vshll.u32 %v4383_v28, %v2185_v24  ;;  %v2194_v43 = vshll.u32 %v4384_v26, %v2185_v24 }
 0x22e   : > { %v2046_v60 = vmul.f32 %v2045_v2, %v2043_v16  ;;  %v1925_v32 = vsub.s32 0, %v1923_v6  ;;  %v2197_v37 = vshll.u32 %v2773_v62, %v2185_v24  ;;  %v2451_v22 = vadd.s32 4294967169, %v2071_v56 }
 0x22f   : > { %v2189_v41 = vshrl.u32 %v4383_v28, %v2186_v45  ;;  %v2192_v30 = vshrl.u32 %v4384_v26, %v2186_v45  ;;  %v2195_v40 = vshrl.u32 %v2773_v62, %v2186_v45  ;;  %v2198_v0 = vshrl.u32 %v2774_v52, %v2186_v45 }
 0x230   : > { %v2047_v50 = vxor.u32 2147483648, %v2046_v60  ;;  %v2444_v39 = vmin.u32 %v1925_v32, %v1923_v6  ;;  %v4192_v63 = vand.u32 8388607, %v2067_v33  ;;  %vm2203_vm12 = vcmp.lt.s32.totalorder %v2184_v5, 1 }
 0x231   : > { %v2190_v19 = vor.u32 %v2189_v41, %v2188_v12  ;;  %v2193_v36 = vor.u32 %v2192_v30, %v2191_v34  ;;  %v2196_v48 = vor.u32 %v2195_v40, %v2194_v43  ;;  %v2199_v17 = vor.u32 %v2198_v0, %v2197_v37 }
 0x232   : > { %v2048_v55 = vsel %vm1965_vm4, %v2047_v50, %v2046_v60  ;;  %v1927_v1 = vclz %v2444_v39  ;;  %v2200_v14 = vshll.u32 %v2774_v52, %v2185_v24  ;;  %v2201_v7 = vshrl.u32 %v4385_v15, %v2186_v45 }
 0x233   : > { %v2051_v53 = vsel %vm4140_vm3, %v3956_v18, %v2048_v55  ;;  %v2187_v31 = vshrl.u32 %v2770_v49, %v2186_v45  ;;  %vm2205_vm13 = vcmp.lt.s32.totalorder %v2184_v5, 3  ;;  %vm2206_vm14 = vcmp.lt.s32.totalorder %v2184_v5, 4 }
 0x234   : > { %2659 = vcosq.f32 %v2051_v53  ;;  %v2445_v35 = vadd.s32 4294967294, %v1927_v1  ;;  %v2211_v44 = vsel %vm2203_vm12, %v2190_v19, %v2193_v36  ;;  %v2202_v25 = vor.u32 %v2201_v7, %v2200_v14 }
 0x235   : > { %2661 = vsinq.f32 %v2051_v53  ;;  %v2208_v47 = vsel %vm2206_vm14, %v2196_v48, 2102212464  ;;  %v2212_v29 = vsel %vm2206_vm14, %v2199_v17, 920167782  ;;  %v2207_v20 = vsel %vm2203_vm12, %v2187_v31, %v2190_v19 }
 0x236   : > { %vm2446_vm15 = vcmp.lt.s32.totalorder %v2445_v35, 0  ;;  %v2209_v21 = vsel %vm2205_vm13, %v2193_v36, %v2208_v47  ;;  %v2213_v58 = vsel %vm2205_vm13, %v2196_v48, %v2212_v29  ;;  %vm2204_vm0 = vcmp.lt.s32.totalorder %v2184_v5, 2 }
 0x237   : > { %v1930_v46 = vsel %vm2446_vm15, 0, %v2445_v35  ;;  %v2215_v13 = vsel %vm2203_vm12, %v2193_v36, %v2196_v48  ;;  %v2214_v4 = vsel %vm2204_vm0, %v2211_v44, %v2213_v58  ;;  %v2216_v27 = vsel %vm2206_vm14, %v2202_v25, 1326507024 }
 0x238   : > { %v1931_v42 = vsub.s32 32, %v1930_v46  ;;  %v1935_v59 = vsub.s32 4294967266, %v1930_v46  ;;  %v1932_v57 = vshll.u32 %v1923_v6, %v1930_v46  ;;  %v2077_v51 = vadd.s32 1, %v2451_v22 }
 0x239   : > { %v2210_v24 = vsel %vm2204_vm0, %v2207_v20, %v2209_v21  ;;  %v2217_v60 = vsel %vm2205_vm13, %v2199_v17, %v2216_v27  ;;  %v4207_v32 = vmul.u32.u64.low %v4174_v54, %v2214_v4  ;;  %v4208_v12 = vmul.u32.u64.high %v4174_v54, %v2214_v4, %v4207_v32 }
 0x23a   : > { %v1933_v16 = vshrl.u32 %v1915_v9, %v1931_v42  ;;  %v1936_v2 = vadd.s32 127, %v1935_v59  ;;  %v2218_v45 = vsel %vm2204_vm0, %v2215_v13, %v2217_v60  ;;  %vm2078_vm1 = vcmp.gt.s32.totalorder %v2077_v51, 0 }
 0x23b   : > { %v4212_v6 = vmul.u32.u64.low %v4174_v54, %v2218_v45  ;;  %v4213_v41 = vmul.u32.u64.high %v4174_v54, %v2218_v45, %v4212_v6  ;;  %vm2055_vm2 = vweird.f32 %v3956_v18  ;;  %vm1861_vm3 = vcmp.lt.s32.totalorder %v3990_v3, 0 }
 0x23c   : > { %v1934_v56 = vor.u32 %v1933_v16, %v1932_v57  ;;  %v1937_v50 = vshll.u32 %v1936_v2, 23  ;;  %v1945_v9 = vsub.s32 4, %v4163_v11  ;;  %v2079_v5 = vsel %vm2078_vm1, %v2077_v51, 0 }
 0x23d   : > { %vm2058_vm4 = vcmp.lt.s32.totalorder %v4171_v23, 2  ;;  %vm2059_vm5 = vcmp.eq.s32.totalorder %v4171_v23, 0  ;;  %vm4222_vm6 = vcmp.le.f32.partialorder %v1859_v61, 0.7853982  ;;  %v2081_v39 = vand.u32 31, %v2079_v5 }
 0x23e   : > { %v1938_v30 = vor.u32 4788187, %v1937_v50  ;;  %vm2062_vm7 = vcmp.eq.s32.totalorder %v4171_v23, 2  ;;  %v2226_v43 = vmul.u32 %v4174_v54, %v2210_v24  ;;  %v2229_v40 = vadd.s32 1, %v4208_v12 }
 0x23f   : > { %v2075_v37 = vor.u32 8388608, %v4192_v63  ;;  %v1941_v36 = vcvt.s32.f32 %v1934_v56  ;;  %vm2228_vm8 = vc.u32 %v4213_v41, %v4207_v32  ;;  %v2082_v61 = vsub.s32 32, %v2081_v39 }
 0x240   : > { %v1939_v19 = vand.u32 2147483647, %v1938_v30  ;;  %v1946_v1 = vsel %vm1861_vm3, %v1945_v9, %v4163_v11  ;;  %v2230_v22 = vsel %vm2228_vm8, %v2229_v40, %v4208_v12  ;;  %v2080_v54 = vshrl.u32 %v2079_v5, 5 }
 0x241   : > { %v2660_v55 = vpop.eup %2659  ;;  %v2231_v35 = vadd.s32 %v2230_v22, %v2226_v43  ;;  %v2084_v63 = vshll.u32 %v2770_v49, %v2081_v39  ;;  %v2085_v7 = vshrl.u32 %v4383_v28, %v2082_v61  ;;  %v2087_v31 = vshll.u32 %v4383_v28, %v2081_v39 }
 0x242   : > { %v2662_v0 = vpop.eup %2661  ;;  %v2063_v53 = vxor.u32 2147483648, %v2660_v55  ;;  %v1942_v17 = vmul.f32 %v1941_v36, %v1939_v19  ;;  %v2088_v44 = vshrl.u32 %v4384_v26, %v2082_v61  ;;  %v2090_v29 = vshll.u32 %v4384_v26, %v2081_v39 }
 0x243   : > { %v2060_v48 = vxor.u32 2147483648, %v2662_v0  ;;  %v2232_v47 = vadd.s32 536870912, %v2231_v35  ;;  %v2086_v20 = vor.u32 %v2085_v7, %v2084_v63  ;;  %v2091_v58 = vshrl.u32 %v2773_v62, %v2082_v61 }
 0x244   : > { %v2064_v14 = vsel %vm2062_vm7, %v2063_v53, %v2662_v0  ;;  %v1943_v25 = vxor.u32 2147483648, %v1942_v17  ;;  %v2089_v21 = vor.u32 %v2088_v44, %v2087_v31  ;;  %v2093_v13 = vshll.u32 %v2773_v62, %v2081_v39 }
 0x245   : > { %v2061_v11 = vsel %vm2059_vm5, %v2660_v55, %v2060_v48  ;;  %v4252_v59 = vshrl.u32 %v2232_v47, 30  ;;  %v2094_v23 = vshrl.u32 %v2774_v52, %v2082_v61  ;;  %v2096_v57 = vshll.u32 %v2774_v52, %v2081_v39 }
 0x246   : > { %v2065_v46 = vsel %vm2058_vm4, %v2061_v11, %v2064_v14  ;;  %v1944_v28 = vsel %vm1861_vm3, %v1943_v25, %v1942_v17  ;;  %v2097_v4 = vshrl.u32 %v4385_v15, %v2082_v61  ;;  %v1948_v18 = vsel %vm4222_vm6, 0, %v1946_v1 }
 0x247   : > { %v2066_v42 = vsel %vm2055_vm2, nan, %v2065_v46  ;;  %v1947_v26 = vsel %vm4222_vm6, %v3990_v3, %v1944_v28  ;;  %v2234_v27 = vshll.u32 %v4252_v59, 30  ;;  %v2092_v51 = vor.u32 %v2091_v58, %v2090_v29 }
 0x248   : > { %2288 = vst [vmem:[%s3407_s8 + $0x68] sm:$0xff] %v2066_v42  ;;  %2663 = vcosq.f32 %v1947_v26  ;;  %v2095_v62 = vor.u32 %v2094_v23, %v2093_v13  ;;  %v2098_v16 = vor.u32 %v2097_v4, %v2096_v57  ;;  %vm2099_vm10 = vcmp.lt.s32.totalorder %v2080_v54, 1 }
 0x249   : > { %2665 = vsinq.f32 %v1947_v26  ;;  %v2235_v2 = vsub.s32 %v2231_v35, %v2234_v27  ;;  %v1952_v24 = vadd.s32 3, %v1948_v18  ;;  %vm2102_vm9 = vcmp.lt.s32.totalorder %v2080_v54, 4 }
 0x24a   : > { %v2107_v60 = vsel %vm2099_vm10, %v2086_v20, %v2089_v21  ;;  %v2115_v45 = vshll.u32 %v2075_v37, 8  ;;  %vm2100_vm11 = vcmp.lt.s32.totalorder %v2080_v54, 2  ;;  %vm2101_vm12 = vcmp.lt.s32.totalorder %v2080_v54, 3 }
 0x24b   : > { %v2237_v52 = vsub.s32 0, %v2235_v2  ;;  %v2108_v15 = vsel %vm2102_vm9, %v2095_v62, 920167782  ;;  %v2104_v12 = vsel %vm2102_vm9, %v2092_v51, 2102212464  ;;  %v2111_v50 = vsel %vm2099_vm10, %v2089_v21, %v2092_v51 }
 0x24c   : > { %v2109_v56 = vsel %vm2101_vm12, %v2092_v51, %v2108_v15  ;;  %v2112_v6 = vsel %vm2102_vm9, %v2098_v16, 1326507024  ;;  %v2083_v5 = vshrl.u32 %v2770_v49, %v2082_v61  ;;  %v2105_v19 = vsel %vm2101_vm12, %v2089_v21, %v2104_v12 }
 0x24d   : > { %v2456_v9 = vmin.u32 %v2237_v52, %v2235_v2  ;;  %v2110_v34 = vsel %vm2100_vm11, %v2107_v60, %v2109_v56  ;;  %v2113_v30 = vsel %vm2101_vm12, %v2095_v62, %v2112_v6  ;;  %v1953_v36 = vand.u32 3, %v1952_v24 }
 0x24e   : > { %v2114_v39 = vsel %vm2100_vm11, %v2111_v50, %v2113_v30  ;;  %v4270_v43 = vmul.u32.u64.low %v2115_v45, %v2110_v34  ;;  %v4271_v40 = vmul.u32.u64.high %v2115_v45, %v2110_v34, %v4270_v43  ;;  %v2103_v55 = vsel %vm2099_vm10, %v2083_v5, %v2086_v20 }
 0x24f   : > { %v2239_v37 = vclz %v2456_v9  ;;  %v4274_v0 = vmul.u32.u64.low %v2115_v45, %v2114_v39  ;;  %v4275_v53 = vmul.u32.u64.high %v2115_v45, %v2114_v39, %v4274_v0  ;;  %v2106_v22 = vsel %vm2100_vm11, %v2103_v55, %v2105_v19 }
 0x250   : > { %v2125_v49 = vadd.s32 1, %v4271_v40  ;;  %vm1955_vm14 = vcmp.eq.s32.totalorder %v1953_v36, 0  ;;  %v2227_v48 = vadd.s32 %v4207_v32, %v4213_v41  ;;  %v2122_v31 = vmul.u32 %v2115_v45, %v2106_v22 }
 0x251   : > { %v2457_v1 = vadd.s32 4294967294, %v2239_v37  ;;  %vm2124_vm15 = vc.u32 %v4275_v53, %v4270_v43  ;;  %vm1958_vm0 = vcmp.eq.s32.totalorder %v1953_v36, 2  ;;  %vm1951_vm1 = vweird.f32 %v3990_v3 }
 0x252   : > { %v2126_v11 = vsel %vm2124_vm15, %v2125_v49, %v4271_v40  ;;  %vm1954_vm2 = vcmp.lt.s32.totalorder %v1953_v36, 2  ;;  %vm2173_vm3 = vcmp.lt.s32.totalorder %v4117_v8, 0  ;;  %v2257_v3 = vsub.s32 4, %v4252_v59 }
 0x253   : > { %vm2458_vm13 = vcmp.lt.s32.totalorder %v2457_v1, 0  ;;  %v2127_v46 = vadd.s32 %v2126_v11, %v2122_v31  ;;  %vm2172_vm4 = vcmp.le.f32.partialorder %v2171_v38, 0.7853982  ;;  %v2123_v12 = vadd.s32 %v4270_v43, %v4275_v53 }
 0x254   : > { %v2242_v17 = vsel %vm2458_vm13, 0, %v2457_v1  ;;  %v2258_v60 = vsel %vm2173_vm3, %v2257_v3, %v4252_v59  ;;  %vm2263_vm10 = vweird.f32 %v4117_v8  ;;  %vm2069_vm9 = vcmp.lt.s32.totalorder %v4160_v10, 0 }
 0x255   : > { %v2664_v61 = vpop.eup %2663  ;;  %v2243_v14 = vsub.s32 32, %v2242_v17  ;;  %v2247_v7 = vsub.s32 4294967266, %v2242_v17  ;;  %v2244_v54 = vshll.u32 %v2235_v2, %v2242_v17  ;;  %v2128_v58 = vadd.s32 536870912, %v2127_v46 }
 0x256   : > { %v2666_v35 = vpop.eup %2665  ;;  %v1959_v63 = vxor.u32 2147483648, %v2664_v61  ;;  %v2260_v52 = vsel %vm2172_vm4, 0, %v2258_v60  ;;  %vm2068_vm11 = vcmp.le.f32.partialorder %v2067_v33, 0.7853982  ;;  %vm2159_vm15 = vweird.f32 %v4160_v10 }
 0x257   : > { %v1956_v44 = vxor.u32 2147483648, %v2666_v35  ;;  %v2245_v47 = vshrl.u32 %v2227_v48, %v2243_v14  ;;  %v2248_v29 = vadd.s32 127, %v2247_v7  ;;  %v2129_v13 = vshrl.u32 %v2128_v58, 30 }
 0x258   : > { %v1960_v25 = vsel %vm1958_vm0, %v1959_v63, %v2666_v35  ;;  %v2264_v6 = vadd.s32 3, %v2260_v52 }
 0x259   : > { %v1957_v32 = vsel %vm1955_vm14, %v2664_v61, %v1956_v44  ;;  %v2246_v20 = vor.u32 %v2245_v47, %v2244_v54  ;;  %v2249_v21 = vshll.u32 %v2248_v29, 23  ;;  %v2130_v57 = vshll.u32 %v2129_v13, 30 }
 0x25a   : > { %v1961_v41 = vsel %vm1954_vm2, %v1957_v32, %v1960_v25  ;;  %v2265_v39 = vand.u32 3, %v2264_v6  ;;  %v2153_v48 = vsub.s32 4, %v2129_v13 }
 0x25b   : > { %v1962_v42 = vsel %vm1951_vm1, nan, %v1961_v41  ;;  %v2250_v28 = vor.u32 4788187, %v2249_v21  ;;  %v2253_v23 = vcvt.s32.f32 %v2246_v20  ;;  %v2131_v18 = vsub.s32 %v2127_v46, %v2130_v57 }
 0x25c   : > { %2287 = vst [vmem:[%s3407_s8 + $0x60] sm:$0xff] %v1962_v42  ;;  %vm2270_vm6 = vcmp.eq.s32.totalorder %v2265_v39, 2  ;;  %vm2267_vm7 = vcmp.eq.s32.totalorder %v2265_v39, 0  ;;  %vm2266_vm8 = vcmp.lt.s32.totalorder %v2265_v39, 2  ;;  %v2154_v63 = vsel %vm2069_vm9, %v2153_v48, %v2129_v13 }
 0x25d   : > { %v2251_v26 = vand.u32 2147483647, %v2250_v28  ;;  %v2133_v51 = vsub.s32 0, %v2131_v18  ;;  %v2156_v14 = vsel %vm2068_vm11, 0, %v2154_v63 }
 0x25f   : > { %v2254_v4 = vmul.f32 %v2253_v23, %v2251_v26  ;;  %v2452_v16 = vmin.u32 %v2133_v51, %v2131_v18 }
 0x261   : > { %v2255_v27 = vxor.u32 2147483648, %v2254_v4  ;;  %v2135_v24 = vclz %v2452_v16 }
 0x263   : > { %v2256_v62 = vsel %vm2173_vm3, %v2255_v27, %v2254_v4  ;;  %v2453_v45 = vadd.s32 4294967294, %v2135_v24 }
 0x264   : > { %v2259_v2 = vsel %vm2172_vm4, %v4117_v8, %v2256_v62  ;;  %v2160_v8 = vadd.s32 3, %v2156_v14 }
 0x265   : > { %2667 = vcosq.f32 %v2259_v2  ;;  %vm2454_vm5 = vcmp.lt.s32.totalorder %v2453_v45, 0 }
 0x266   : > { %2669 = vsinq.f32 %v2259_v2  ;;  %v2138_v15 = vsel %vm2454_vm5, 0, %v2453_v45  ;;  %v2161_v7 = vand.u32 3, %v2160_v8 }
 0x267   : > { %v2139_v56 = vsub.s32 32, %v2138_v15  ;;  %v2143_v50 = vsub.s32 4294967266, %v2138_v15  ;;  %v2140_v9 = vshll.u32 %v2131_v18, %v2138_v15 }
 0x268   : > { %vm2166_vm12 = vcmp.eq.s32.totalorder %v2161_v7, 2  ;;  %vm2163_vm13 = vcmp.eq.s32.totalorder %v2161_v7, 0  ;;  %vm2162_vm14 = vcmp.lt.s32.totalorder %v2161_v7, 2 }
 0x269   : > { %v2141_v38 = vshrl.u32 %v2123_v12, %v2139_v56  ;;  %v2144_v5 = vadd.s32 127, %v2143_v50 }
 0x26b   : > { %v2142_v34 = vor.u32 %v2141_v38, %v2140_v9  ;;  %v2145_v30 = vshll.u32 %v2144_v5, 23 }
 0x26d   : > { %v2146_v40 = vor.u32 4788187, %v2145_v30  ;;  %v2149_v36 = vcvt.s32.f32 %v2142_v34 }
 0x26f   : > { %v2147_v19 = vand.u32 2147483647, %v2146_v40 }
 0x271   : > { %v2150_v53 = vmul.f32 %v2149_v36, %v2147_v19 }
 0x272   : > { %v2668_v37 = vpop.eup %2667 }
 0x273   : > { %v2670_v55 = vpop.eup %2669  ;;  %v2271_v59 = vxor.u32 2147483648, %v2668_v37  ;;  %v2151_v49 = vxor.u32 2147483648, %v2150_v53 }
 0x274   : > { %v2268_v0 = vxor.u32 2147483648, %v2670_v55 }
 0x275   : > { %v2272_v43 = vsel %vm2270_vm6, %v2271_v59, %v2670_v55  ;;  %v2152_v17 = vsel %vm2069_vm9, %v2151_v49, %v2150_v53 }
 0x276   : > { %v2269_v1 = vsel %vm2267_vm7, %v2668_v37, %v2268_v0  ;;  %v2155_v35 = vsel %vm2068_vm11, %v4160_v10, %v2152_v17 }
 0x277   : > { %v2273_v22 = vsel %vm2266_vm8, %v2269_v1, %v2272_v43  ;;  %2671 = vcosq.f32 %v2155_v35 }
 0x278   : > { %v2274_v61 = vsel %vm2263_vm10, nan, %v2273_v22  ;;  %2673 = vsinq.f32 %v2155_v35 }
 0x279   : > { %2290 = vst [vmem:[%s3407_s8 + $0x78] sm:$0xff] %v2274_v61 }
 0x284   : > { %v2672_v31 = vpop.eup %2671 }
 0x285   : > { %v2674_v44 = vpop.eup %2673  ;;  %v2167_v54 = vxor.u32 2147483648, %v2672_v31 }
 0x286   : > { %v2164_v33 = vxor.u32 2147483648, %v2674_v44 }
 0x287   : > { %v2168_v11 = vsel %vm2166_vm12, %v2167_v54, %v2674_v44 }
 0x288   : > { %v2165_v25 = vsel %vm2163_vm13, %v2672_v31, %v2164_v33 }
 0x289   : > { %v2169_v47 = vsel %vm2162_vm14, %v2165_v25, %v2168_v11 }
 0x28a   : > { %v2170_v29 = vsel %vm2159_vm15, nan, %v2169_v47 }
 0x28b   : > { %2289 = vst [vmem:[%s3407_s8 + $0x70] sm:$0xff] %v2170_v29 }
 0x28c   : > { %2688 = shalt.err (!%p2685_p6)
}
 0x28d   : > { %s2689_s27 = scalar_lea.hbm %s4305_s16, 2048  ;;  %s2693_s10 = scalar_lea.hbm %s4369_s5, 8192 }
 0x28e   : > { %p2690_p7 = scmp.ne.s32.totalorder %s4305_s16, %s2689_s27  ;;  %p2694_p11 = scmp.lt.s32.totalorder %s4305_s16, %s4369_s5 }
 0x28f   : > { %p2695_p12 = scmp.lt.s32.totalorder %s2693_s10, %s2689_s27 }
 0x290   : > { %p2691_p9 = pnand %p2690_p7, %p2861_p3 }
 0x291   : > { %p2696_p13 = por %p2695_p12, %p2694_p11 }
 0x292   : > { %p2692_p10 = pneg %p2691_p9 }
 0x294   : > { %p2697_p0 = pnand %p2696_p13, %p2692_p10 }
 0x296   : > { %2700 = shalt.err (!%p2697_p0)
}
 0x297   : > { %s2777_s15 = smov 128   ;;  %s2778_s22 = smov 256  }
 0x298   : > { %s2779_s17 = smov 8  }
 0x299   : > { %2528 = dma.vmem_to_hbm [thread:$0]  (%p2861_p3), %s4307_s13, 2048, %s4305_s16, %s4313_s21, %s2777_s15, %s2778_s22, %s2779_s17  }
 0x29a PF: > { %p2534_p1 = scmp.ge.s32.totalorder %s2767_s25, 2  ;;  %s2321_s26 = sand.u32 1, %s2739_s18  }
 0x29b   : > { %s2322_s30 = scalar_lea.sflag [#allocation3], %s2321_s26 }
 0x29c   : > { %p2531_p2 = pnand %p2534_p1, %p2870_p8 }
 0x29e   : > { %p2532_p4 = pneg %p2531_p2 }
 0x2a0   : > { %2734 = dma.done.wait (%p2532_p4), %s2322_s30, 2048  }
 0x2a1   : > { %2736 = vsyncadd (%p2532_p4), %s2322_s30, 4294965248  ;;  %s18_s25 = sadd.s32 1, %s2767_s25   ;;  %s4411_s18 = smov %s2743_s19 }
 0x2a2   : > { %p15_p5 = scmp.ge.s32.totalorder %s18_s25, 6   ;;  %s4412_s19 = smov %s2747_s20 }
 0x2a3   : > { %s4413_s20 = smov %s2879_s11  ;;  %s4414_s21 = smov %s2759_s23 }
 0x2a4   : > { %s4415_s22 = smov %s2763_s24  ;;  %s4416_s23 = smov %s4419_s28 }
 0x2a5   : > { %s4417_s24 = smov %s4423_s29  ;;  %17 = sbr.rel (!%p15_p5) target bundleno = 5 (0x5), region = 78 }
 0x2aa   :  { %2327 = vsyncpa [#allocation3], 1 }
 0x2ab   :  { %2329 = vsyncpa [#allocation3 + $0x1], 1 }

</bundles_post_ra>
